<compile_context>
chip_gen: v7x
topology: tpu7x:2x2x1
jax: 0.10.0
libtpu: 0.0.40
codegen_flags: <defaults>
</compile_context>

<pallas_src>
import functools

import jax
import jax.numpy as jnp
from jax.experimental import pallas as pl
from jax.experimental.pallas import tpu as pltpu

MIB = 1024 * 1024


# ---------------------------------------------------------------------------
# Kernel: one batch tile of BB sequences, all heads, fully fused
# ---------------------------------------------------------------------------
def _msa_kernel(x_ref, mask_ref, wqkv_ref, bqkv_ref, wproj_ref, bproj_ref, o_ref,
                *, num_heads: int):
    BB, T, ED = x_ref.shape
    f = mask_ref.shape[0]
    H = num_heads
    hd = ED // H

    # ---- fused QKV projection: bf16 multiplicands, f32 accumulation (MXU) ----
    xb = x_ref[...].astype(jnp.bfloat16).reshape(BB * T, ED)
    qkv = jnp.dot(xb, wqkv_ref[...], preferred_element_type=jnp.float32)
    qkv = qkv + bqkv_ref[...]                                   # (BB*T, 3*ED); q-scale pre-folded

    def split_heads(col):                                       # (BB*T, ED) -> (BB*H, T, hd) bf16
        z = col.astype(jnp.bfloat16).reshape(BB, T, H, hd)
        return jnp.swapaxes(z, 1, 2).reshape(BB * H, T, hd)

    q = split_heads(qkv[:, 0 * ED:1 * ED])
    k = split_heads(qkv[:, 1 * ED:2 * ED])
    v = split_heads(qkv[:, 2 * ED:3 * ED])

    # ---- attention scores, head-batched (single 3-D einsum, no per-head loop) ----
    s = jnp.einsum('bqd,bkd->bqk', q, k,
                   preferred_element_type=jnp.float32)          # (BB*H, T, T) f32
    s = s.reshape(BB, H, T, T)

    # ---- multiplicative mask (attn_mask * adj_mat folded), VMEM-resident (f, T, T) ----
    if BB % f == 0:
        # Tile start is a multiple of f: row r of the tile uses mask row r % f.
        m = mask_ref[...]                                       # (f, T, T)
        s = (s.reshape(BB // f, f, H, T, T) * m[None, :, None, :, :]).reshape(BB, H, T, T)
    else:
        # f % BB == 0: the tile covers BB consecutive mask rows starting at (i*BB) % f.
        off = (pl.program_id(0) * BB) % f
        m = mask_ref[pl.ds(off, BB), :, :]                      # (BB, T, T)
        s = s * m[:, None, :, :]

    # masked_fill(attn == 0, -10000) then softmax(-1), matching the PyTorch module.
    # NOTE: like the reference, this relies on exact float equality — mask zeros propagate
    # exactly; a genuine score that happens to be exactly 0.0 is also masked (same semantics).
    s = jnp.where(s == 0.0, jnp.float32(-10000.0), s)
    s = s - jnp.max(s, axis=-1, keepdims=True)
    p = jnp.exp(s)
    p = p * pl.reciprocal(jnp.sum(p, axis=-1, keepdims=True), approx=True)
    # TODO(synk): attn_drop (training mode) skipped — eval-mode identity.

    # ---- context + head merge + output projection ----
    ctx = jnp.einsum('bqk,bkd->bqd',
                     p.reshape(BB * H, T, T).astype(jnp.bfloat16), v,
                     preferred_element_type=jnp.float32)        # (BB*H, T, hd)
    ctx = jnp.swapaxes(ctx.reshape(BB, H, T, hd), 1, 2).reshape(BB * T, ED)

    y = jnp.dot(ctx.astype(jnp.bfloat16), wproj_ref[...],
                preferred_element_type=jnp.float32)
    y = y + bproj_ref[...]
    # TODO(synk): proj_drop (training mode) skipped — eval-mode identity.
    o_ref[...] = y.reshape(BB, T, ED).astype(o_ref.dtype)


# ---------------------------------------------------------------------------
# Weight preparation (call ONCE, outside the hot path)
# ---------------------------------------------------------------------------
def prepare_msa_params(wqkv, bqkv, wproj, bproj, *, num_heads,
                       compute_dtype=jnp.bfloat16):
    """Folds the q-scale into the QKV weights/bias and casts matmul weights to bf16."""
    ED = wqkv.shape[0]
    assert wqkv.shape == (ED, 3 * ED) and wproj.shape == (ED, ED)
    assert ED % num_heads == 0, 'dim and number of heads are incompatible'
    scale = float(ED // num_heads) ** -0.5
    col_scale = jnp.concatenate([jnp.full((ED,), scale, jnp.float32),
                                 jnp.ones((2 * ED,), jnp.float32)])
    wqkv_p = (wqkv.astype(jnp.float32) * col_scale[None, :]).astype(compute_dtype)
    bqkv_p = (bqkv.astype(jnp.float32) * col_scale).reshape(1, 3 * ED)
    wproj_p = wproj.astype(compute_dtype)
    bproj_p = bproj.astype(jnp.float32).reshape(1, ED)
    return wqkv_p, bqkv_p, wproj_p, bproj_p


# ---------------------------------------------------------------------------
# Tiling / VMEM heuristics
# ---------------------------------------------------------------------------
def _round_up(x, m):
    return (x + m - 1) // m * m


def _vmem_tile_bytes(rows, cols, itemsize):
    """Bytes of a (rows, cols) slab once padded to the (8, 128) VMEM tile grid."""
    return _round_up(max(int(rows), 1), 8) * _round_up(max(int(cols), 1), 128) * int(itemsize)


def _vmem_capacity_bytes():
    try:
        return int(getattr(pltpu.get_tpu_info(), "vmem_capacity_bytes"))
    except Exception:
        return 64 * MIB        # conservative fallback (v7x per-TensorCore VMEM)


def _pick_batch_tile(B_f, f, cap):
    """Largest divisor of B_f that is <= cap and compatible with the (f,T,T) resident mask
    (tile must be a multiple of f, or divide f)."""
    best = 1
    for d in range(1, B_f + 1):
        if B_f % d:
            continue
        if not (d % f == 0 or f % d == 0):
            continue
        if d <= cap:
            best = d
    return best


# ---------------------------------------------------------------------------
# Wrapper
# ---------------------------------------------------------------------------
def msa_forward(x, wqkv_p, bqkv_p, wproj_p, bproj_p, *, B, f, num_heads,
                attn_mask=None, adj_mat=None,
                vmem_budget_bytes=None, min_grid_steps=4):
    """x: (B_f, T, ED) with B_f == B * f.  Weights must come from prepare_msa_params."""
    B_f, T, ED = x.shape
    assert B_f == B * f, "batch dim must equal B * f"
    assert ED % num_heads == 0, "dim and number of heads are incompatible"
    H = num_heads

    # Fold the optional multiplicative masks into one small (f, T, T) table; it stays
    # VMEM-resident inside the kernel (constant index_map) — no B×-replicated HBM stream.
    m = jnp.ones((f, T, T), jnp.float32)
    if attn_mask is not None:
        m = m * attn_mask.astype(jnp.float32)
    if adj_mat is not None:
        m = m * jnp.asarray(adj_mat, jnp.float32)

    # ---- generation-aware VMEM budget / batch-tile selection ----
    x_it = jnp.dtype(x.dtype).itemsize
    w_it = jnp.dtype(wqkv_p.dtype).itemsize

    io_row = _vmem_tile_bytes(T, ED, x_it)                       # one batch row of x (or out)
    interm_row = (_vmem_tile_bytes(T, 3 * ED, 4)                 # qkv f32
                  + 3 * _vmem_tile_bytes(T, ED, 2)               # q / k / v bf16
                  + H * (2 * _vmem_tile_bytes(T, T, 4)           # scores + probs f32
                         + _vmem_tile_bytes(T, T, 2))            # probs bf16
                  + _vmem_tile_bytes(T, ED, 4)                   # ctx f32
                  + _vmem_tile_bytes(T, ED, 2)                   # ctx bf16
                  + _vmem_tile_bytes(T, ED, 4))                  # y f32
    per_row = 2 * 2 * io_row + interm_row                        # x & out tiles double-buffered

    resident = (f * _vmem_tile_bytes(T, T, 4)                    # folded mask
                + _vmem_tile_bytes(ED, 3 * ED, w_it)             # Wqkv
                + _vmem_tile_bytes(1, 3 * ED, 4)                 # bqkv
                + _vmem_tile_bytes(ED, ED, w_it)                 # Wproj
                + _vmem_tile_bytes(1, ED, 4))                    # bproj

    vmem_cap = _vmem_capacity_bytes()
    if vmem_budget_bytes is None:
        vmem_budget_bytes = min(vmem_cap // 2, 48 * MIB)
    tile_budget = max(per_row, vmem_budget_bytes - resident)
    cap = max(1, tile_budget // per_row)
    if min_grid_steps and min_grid_steps > 1:
        cap = min(cap, max(1, B_f // min_grid_steps))            # keep >= 4 steps (v7x megacore)
    BB = _pick_batch_tile(B_f, f, int(cap))
    grid = (B_f // BB,)

    vmem_limit = int(min(vmem_cap - 8 * MIB,
                         max(32 * MIB, int(1.5 * (resident + BB * per_row)))))

    kernel = functools.partial(_msa_kernel, num_heads=num_heads)

    return pl.pallas_call(
        kernel,
        out_shape=jax.ShapeDtypeStruct((B_f, T, ED), x.dtype),
        grid_spec=pltpu.PrefetchScalarGridSpec(
            num_scalar_prefetch=0,
            grid=grid,
            in_specs=[
                pl.BlockSpec((BB, T, ED), lambda i: (i, 0, 0)),   # x tile (pipelined)
                pl.BlockSpec((f, T, T), lambda i: (0, 0, 0)),     # mask  (VMEM-resident)
                pl.BlockSpec((ED, 3 * ED), lambda i: (0, 0)),     # Wqkv  (VMEM-resident)
                pl.BlockSpec((1, 3 * ED), lambda i: (0, 0)),      # bqkv  (VMEM-resident)
                pl.BlockSpec((ED, ED), lambda i: (0, 0)),         # Wproj (VMEM-resident)
                pl.BlockSpec((1, ED), lambda i: (0, 0)),          # bproj (VMEM-resident)
            ],
            out_specs=pl.BlockSpec((BB, T, ED), lambda i: (i, 0, 0)),
        ),
        compiler_params=pltpu.CompilerParams(
            dimension_semantics=("parallel",),                    # megacore sharding on v7x
            vmem_limit_bytes=vmem_limit,
        ),
    )(x, m, wqkv_p, bqkv_p, wproj_p, bproj_p)


# ---------------------------------------------------------------------------
# Plain-JAX reference (mirrors the PyTorch module op-by-op) for correctness
# ---------------------------------------------------------------------------
def msa_ref(x, wqkv, bqkv, wproj, bproj, *, B, f, num_heads,
            attn_mask=None, adj_mat=None):
    B_f, T, ED = x.shape
    H = num_heads
    hd = ED // H
    scale = float(hd) ** -0.5
    hp = jax.lax.Precision.HIGHEST

    qkv = jnp.einsum('bte,ef->btf', x, wqkv, precision=hp) + bqkv
    qkv = qkv.reshape(B_f, T, 3, H, hd).transpose(2, 0, 3, 1, 4)  # (3, B_f, H, T, hd)
    q, k, v = qkv[0], qkv[1], qkv[2]
    q = q * scale
    attn = jnp.einsum('bhqd,bhkd->bhqk', q, k, precision=hp)      # (B_f, H, T, T)
    if attn_mask is not None:
        attn = attn.reshape(B, f, H, T, T) * attn_mask[None, :, None, :, :]
        attn = attn.reshape(B_f, H, T, T)
    if adj_mat is not None:
        attn = attn.reshape(B, f, H, T, T) * adj_mat
        attn = attn.reshape(B_f, H, T, T)
    attn = jnp.where(attn == 0, jnp.float32(-10000.0), attn)
    attn = jax.nn.softmax(attn, axis=-1)
    out = jnp.einsum('bhqk,bhkd->bhqd', attn, v, precision=hp)
    out = out.transpose(0, 2, 1, 3).reshape(B_f, T, ED)
    return jnp.einsum('bte,ef->btf', out, wproj, precision=hp) + bproj


if __name__ == "__main__":
    # Small shapes consistent with the module: B=2 videos, f=4 frames, TP_K=16 tokens,
    # dim=64, 4 heads (head_dim=16).  B_f=8 -> BB=2, grid=(4,).
    B, f, T, dim, num_heads = 2, 4, 16, 64, 4
    B_f = B * f

    key = jax.random.PRNGKey(0)
    kx, kwq, kbq, kwp, kbp, km, ka = jax.random.split(key, 7)

    x = jax.random.normal(kx, (B_f, T, dim), dtype=jnp.float32)
    wqkv = 0.05 * jax.random.normal(kwq, (dim, 3 * dim), dtype=jnp.float32)
    bqkv = 0.05 * jax.random.normal(kbq, (3 * dim,), dtype=jnp.float32)
    wproj = 0.05 * jax.random.normal(kwp, (dim, dim), dtype=jnp.float32)
    bproj = 0.05 * jax.random.normal(kbp, (dim,), dtype=jnp.float32)

    attn_mask = (jax.random.uniform(km, (f, T, T)) > 0.25).astype(jnp.float32)
    adj_mat = (jax.random.uniform(ka, (T, T)) > 0.25).astype(jnp.float32)

    # One-time weight preparation (scale folding + bf16 cast), then the fused kernel.
    params = prepare_msa_params(wqkv, bqkv, wproj, bproj, num_heads=num_heads)
    out = msa_forward(x, *params, B=B, f=f, num_heads=num_heads,
                      attn_mask=attn_mask, adj_mat=adj_mat)
    out = jax.block_until_ready(out)

    ref = msa_ref(x, wqkv, bqkv, wproj, bproj, B=B, f=f, num_heads=num_heads,
                  attn_mask=attn_mask, adj_mat=adj_mat)

    assert out.shape == (B_f, T, dim)
    max_err = float(jnp.max(jnp.abs(out - ref)))
    # bf16 MXU multiplicands (f32 accumulation) vs the f32 reference -> relaxed tolerance.
    assert jnp.allclose(out, ref, atol=2.5e-2, rtol=2.5e-2), f"mismatch vs reference: {max_err}"

    print("KERNEL_OK")
</pallas_src>

<mosaic_0001>
module attributes {stable_mosaic.version = 11 : i64} {
  func.func @_msa_kernel(%arg0: i32, %arg1: memref<2x16x64xf32, #tpu.memory_space<vmem>>, %arg2: memref<4x16x16xf32, #tpu.memory_space<vmem>>, %arg3: memref<64x192xbf16, #tpu.memory_space<vmem>>, %arg4: memref<1x192xf32, #tpu.memory_space<vmem>>, %arg5: memref<64x64xbf16, #tpu.memory_space<vmem>>, %arg6: memref<1x64xf32, #tpu.memory_space<vmem>>, %arg7: memref<2x16x64xf32, #tpu.memory_space<vmem>>) attributes {dimension_semantics = [#tpu.dimension_semantics<parallel>], iteration_bounds = array<i64: 4>, scalar_prefetch = 0 : i64, scratch_operands = 0 : i64, tpu.core_type = #tpu.core_type<tc>, window_params = [{transform_indices = @transform_0, window_bounds = array<i64: 2, 16, 64>}, {pipeline_mode = #tpu.pipeline_mode<synchronous>, transform_indices = @transform_1, window_bounds = array<i64: 4, 16, 16>}, {pipeline_mode = #tpu.pipeline_mode<synchronous>, transform_indices = @transform_2, window_bounds = array<i64: 64, 192>}, {pipeline_mode = #tpu.pipeline_mode<synchronous>, transform_indices = @transform_3, window_bounds = array<i64: 1, 192>}, {pipeline_mode = #tpu.pipeline_mode<synchronous>, transform_indices = @transform_4, window_bounds = array<i64: 64, 64>}, {pipeline_mode = #tpu.pipeline_mode<synchronous>, transform_indices = @transform_5, window_bounds = array<i64: 1, 64>}, {transform_indices = @transform_6, window_bounds = array<i64: 2, 16, 64>}]} {
    %c0 = arith.constant 0 : index
    %c0_0 = arith.constant 0 : index
    %c0_1 = arith.constant 0 : index
    %0 = vector.load %arg1[%c0, %c0_0, %c0_1] : memref<2x16x64xf32, #tpu.memory_space<vmem>>, vector<2x16x64xf32>
    %1 = arith.truncf %0 : vector<2x16x64xf32> to vector<2x16x64xbf16>
    %2 = vector.shape_cast %1 : vector<2x16x64xbf16> to vector<32x64xbf16>
    %c0_2 = arith.constant 0 : index
    %c0_3 = arith.constant 0 : index
    %3 = vector.load %arg3[%c0_2, %c0_3] : memref<64x192xbf16, #tpu.memory_space<vmem>>, vector<64x192xbf16>
    %cst = arith.constant dense<0.000000e+00> : vector<32x192xf32>
    %4 = tpu.matmul %2, %3, %cst {dimension_numbers = #tpu.dot_dimension_numbers<[1], [0], [0], [1], [0, 0, 1, 1], [], []>} : vector<32x64xbf16>, vector<64x192xbf16>, vector<32x192xf32> -> vector<32x192xf32>
    %c0_4 = arith.constant 0 : index
    %c0_5 = arith.constant 0 : index
    %5 = vector.load %arg4[%c0_4, %c0_5] : memref<1x192xf32, #tpu.memory_space<vmem>>, vector<1x192xf32>
    %6 = vector.broadcast %5 : vector<1x192xf32> to vector<32x192xf32>
    %7 = arith.addf %4, %6 : vector<32x192xf32>
    %8 = vector.extract_strided_slice %7 {offsets = [0, 0], sizes = [32, 64], strides = [1, 1]} : vector<32x192xf32> to vector<32x64xf32>
    %9 = arith.truncf %8 : vector<32x64xf32> to vector<32x64xbf16>
    %10 = vector.shape_cast %9 : vector<32x64xbf16> to vector<2x16x4x16xbf16>
    %11 = tpu.transpose %10, [0, 2, 1, 3] : vector<2x16x4x16xbf16> -> vector<2x4x16x16xbf16>
    %12 = vector.shape_cast %11 : vector<2x4x16x16xbf16> to vector<8x16x16xbf16>
    %13 = vector.extract_strided_slice %7 {offsets = [0, 64], sizes = [32, 64], strides = [1, 1]} : vector<32x192xf32> to vector<32x64xf32>
    %14 = arith.truncf %13 : vector<32x64xf32> to vector<32x64xbf16>
    %15 = vector.shape_cast %14 : vector<32x64xbf16> to vector<2x16x4x16xbf16>
    %16 = tpu.transpose %15, [0, 2, 1, 3] : vector<2x16x4x16xbf16> -> vector<2x4x16x16xbf16>
    %17 = vector.shape_cast %16 : vector<2x4x16x16xbf16> to vector<8x16x16xbf16>
    %18 = vector.extract_strided_slice %7 {offsets = [0, 128], sizes = [32, 64], strides = [1, 1]} : vector<32x192xf32> to vector<32x64xf32>
    %19 = arith.truncf %18 : vector<32x64xf32> to vector<32x64xbf16>
    %20 = vector.shape_cast %19 : vector<32x64xbf16> to vector<2x16x4x16xbf16>
    %21 = tpu.transpose %20, [0, 2, 1, 3] : vector<2x16x4x16xbf16> -> vector<2x4x16x16xbf16>
    %22 = vector.shape_cast %21 : vector<2x4x16x16xbf16> to vector<8x16x16xbf16>
    "tpu.trace_start"() <{level = 10 : i32, message = "bqd,bkd->bqk"}> : () -> ()
    %cst_6 = arith.constant dense<0.000000e+00> : vector<8x16x16xf32>
    %23 = tpu.matmul %12, %17, %cst_6 {dimension_numbers = #tpu.dot_dimension_numbers<[2], [2], [1], [1], [0, 0, 0, 1, 1, 1], [0], [0]>} : vector<8x16x16xbf16>, vector<8x16x16xbf16>, vector<8x16x16xf32> -> vector<8x16x16xf32>
    "tpu.trace_stop"() : () -> ()
    %24 = vector.shape_cast %23 : vector<8x16x16xf32> to vector<2x4x16x16xf32>
    %c2_i32 = arith.constant 2 : i32
    %25 = arith.muli %arg0, %c2_i32 : i32
    %c4_i32 = arith.constant 4 : i32
    %c0_i32 = arith.constant 0 : i32
    %26 = arith.cmpi eq, %c4_i32, %c0_i32 : i32
    %c1_i32 = arith.constant 1 : i32
    %27 = arith.select %26, %c1_i32, %c4_i32 : i32
    %28 = arith.remsi %25, %27 : i32
    %c0_i32_7 = arith.constant 0 : i32
    %29 = arith.cmpi ne, %28, %c0_i32_7 : i32
    %c0_i32_8 = arith.constant 0 : i32
    %30 = arith.cmpi slt, %28, %c0_i32_8 : i32
    %c0_i32_9 = arith.constant 0 : i32
    %31 = arith.cmpi slt, %27, %c0_i32_9 : i32
    %32 = arith.xori %30, %31 : i1
    %33 = arith.andi %32, %29 : i1
    %34 = arith.addi %28, %27 : i32
    %35 = arith.select %33, %34, %28 : i32
    %36 = arith.index_cast %35 : i32 to index
    %c0_10 = arith.constant 0 : index
    %c0_11 = arith.constant 0 : index
    %37 = vector.load %arg2[%36, %c0_10, %c0_11] : memref<4x16x16xf32, #tpu.memory_space<vmem>>, vector<2x16x16xf32>
    %38 = vector.shape_cast %37 : vector<2x16x16xf32> to vector<2x1x16x16xf32>
    %39 = vector.broadcast %38 : vector<2x1x16x16xf32> to vector<2x4x16x16xf32>
    %40 = arith.mulf %24, %39 : vector<2x4x16x16xf32>
    %cst_12 = arith.constant 0.000000e+00 : f32
    %41 = vector.broadcast %cst_12 : f32 to vector<2x4x16x16xf32>
    %42 = arith.cmpf oeq, %40, %41 : vector<2x4x16x16xf32>
    %cst_13 = arith.constant -1.000000e+04 : f32
    %43 = vector.broadcast %cst_13 : f32 to vector<2x4x16x16xf32>
    %44 = arith.select %42, %43, %40 : vector<2x4x16x16xi1>, vector<2x4x16x16xf32>
    %cst_14 = arith.constant dense<0xFF800000> : vector<2x4x16xf32>
    %45 = vector.multi_reduction <maximumf>, %44, %cst_14 [3] : vector<2x4x16x16xf32> to vector<2x4x16xf32>
    %46 = vector.shape_cast %45 : vector<2x4x16xf32> to vector<2x4x16x1xf32>
    %47 = vector.broadcast %46 : vector<2x4x16x1xf32> to vector<2x4x16x16xf32>
    %48 = arith.subf %44, %47 : vector<2x4x16x16xf32>
    %49 = math.exp %48 : vector<2x4x16x16xf32>
    %cst_15 = arith.constant dense<0.000000e+00> : vector<2x4x16xf32>
    %50 = vector.multi_reduction <add>, %49, %cst_15 [3] : vector<2x4x16x16xf32> to vector<2x4x16xf32>
    %51 = vector.shape_cast %50 : vector<2x4x16xf32> to vector<2x4x16x1xf32>
    %52 = tpu.reciprocal %51 {approx = true} : vector<2x4x16x1xf32> -> vector<2x4x16x1xf32>
    %53 = vector.broadcast %52 : vector<2x4x16x1xf32> to vector<2x4x16x16xf32>
    %54 = arith.mulf %49, %53 : vector<2x4x16x16xf32>
    %55 = vector.shape_cast %54 : vector<2x4x16x16xf32> to vector<8x16x16xf32>
    %56 = arith.truncf %55 : vector<8x16x16xf32> to vector<8x16x16xbf16>
    "tpu.trace_start"() <{level = 10 : i32, message = "bqk,bkd->bqd"}> : () -> ()
    %cst_16 = arith.constant dense<0.000000e+00> : vector<8x16x16xf32>
    %57 = tpu.matmul %56, %22, %cst_16 {dimension_numbers = #tpu.dot_dimension_numbers<[2], [1], [1], [2], [0, 0, 0, 1, 1, 2], [0], [0]>} : vector<8x16x16xbf16>, vector<8x16x16xbf16>, vector<8x16x16xf32> -> vector<8x16x16xf32>
    "tpu.trace_stop"() : () -> ()
    %58 = vector.shape_cast %57 : vector<8x16x16xf32> to vector<2x4x16x16xf32>
    %59 = tpu.transpose %58, [0, 2, 1, 3] : vector<2x4x16x16xf32> -> vector<2x16x4x16xf32>
    %60 = vector.shape_cast %59 : vector<2x16x4x16xf32> to vector<32x64xf32>
    %61 = arith.truncf %60 : vector<32x64xf32> to vector<32x64xbf16>
    %c0_17 = arith.constant 0 : index
    %c0_18 = arith.constant 0 : index
    %62 = vector.load %arg5[%c0_17, %c0_18] : memref<64x64xbf16, #tpu.memory_space<vmem>>, vector<64x64xbf16>
    %cst_19 = arith.constant dense<0.000000e+00> : vector<32x64xf32>
    %63 = tpu.matmul %61, %62, %cst_19 {dimension_numbers = #tpu.dot_dimension_numbers<[1], [0], [0], [1], [0, 0, 1, 1], [], []>} : vector<32x64xbf16>, vector<64x64xbf16>, vector<32x64xf32> -> vector<32x64xf32>
    %c0_20 = arith.constant 0 : index
    %c0_21 = arith.constant 0 : index
    %64 = vector.load %arg6[%c0_20, %c0_21] : memref<1x64xf32, #tpu.memory_space<vmem>>, vector<1x64xf32>
    %65 = vector.broadcast %64 : vector<1x64xf32> to vector<32x64xf32>
    %66 = arith.addf %63, %65 : vector<32x64xf32>
    %67 = vector.shape_cast %66 : vector<32x64xf32> to vector<2x16x64xf32>
    %c0_22 = arith.constant 0 : index
    %c0_23 = arith.constant 0 : index
    %c0_24 = arith.constant 0 : index
    %68 = vector.load %arg7[%c0_22, %c0_23, %c0_24] : memref<2x16x64xf32, #tpu.memory_space<vmem>>, vector<2x16x64xf32>
    tpu.vector_store %arg7[%c0_22, %c0_23, %c0_24], %67 {strides = array<i32>} : memref<2x16x64xf32, #tpu.memory_space<vmem>>, vector<2x16x64xf32>,
    return
  }
  func.func @transform_0(%arg0: i32) -> (i32, i32, i32) {
    %c0_i32 = arith.constant 0 : i32
    %c0_i32_0 = arith.constant 0 : i32
    %c0_i32_1 = arith.constant 0 : i32
    return %arg0, %c0_i32, %c0_i32_0 : i32, i32, i32
  }
  func.func @transform_1(%arg0: i32) -> (i32, i32, i32) {
    %c0_i32 = arith.constant 0 : i32
    %c0_i32_0 = arith.constant 0 : i32
    %c0_i32_1 = arith.constant 0 : i32
    %c0_i32_2 = arith.constant 0 : i32
    return %c0_i32, %c0_i32_0, %c0_i32_1 : i32, i32, i32
  }
  func.func @transform_2(%arg0: i32) -> (i32, i32) {
    %c0_i32 = arith.constant 0 : i32
    %c0_i32_0 = arith.constant 0 : i32
    %c0_i32_1 = arith.constant 0 : i32
    return %c0_i32, %c0_i32_0 : i32, i32
  }
  func.func @transform_3(%arg0: i32) -> (i32, i32) {
    %c0_i32 = arith.constant 0 : i32
    %c0_i32_0 = arith.constant 0 : i32
    %c0_i32_1 = arith.constant 0 : i32
    return %c0_i32, %c0_i32_0 : i32, i32
  }
  func.func @transform_4(%arg0: i32) -> (i32, i32) {
    %c0_i32 = arith.constant 0 : i32
    %c0_i32_0 = arith.constant 0 : i32
    %c0_i32_1 = arith.constant 0 : i32
    return %c0_i32, %c0_i32_0 : i32, i32
  }
  func.func @transform_5(%arg0: i32) -> (i32, i32) {
    %c0_i32 = arith.constant 0 : i32
    %c0_i32_0 = arith.constant 0 : i32
    %c0_i32_1 = arith.constant 0 : i32
    return %c0_i32, %c0_i32_0 : i32, i32
  }
  func.func @transform_6(%arg0: i32) -> (i32, i32, i32) {
    %c0_i32 = arith.constant 0 : i32
    %c0_i32_0 = arith.constant 0 : i32
    %c0_i32_1 = arith.constant 0 : i32
    return %arg0, %c0_i32, %c0_i32_0 : i32, i32, i32
  }
}

</mosaic_0001>

<bundles_post_ra>
// kernel: tpu_custom_call.1
= control target key start
LH: loop header
LB: loop body
LE: loop exit
PB: predicated region body
PF: predicated region fallthrough
CT: control target
= control target key end

     0   :  { %11 = vsyncpa [#allocation3], 0  ;;  %s5518_s0 = inlined_call_operand.hbm [shape: f32[8,16,64], index: 0, kind: input, shape index: {}]   ;;  %s5519_s1 = inlined_call_operand.hbm [shape: f32[4,16,16], index: 1, kind: input, shape index: {}]   ;;  %s5520_s2 = inlined_call_operand.hbm [shape: bf16[64,192], index: 2, kind: input, shape index: {}]   ;;  %s5521_s3 = inlined_call_operand.vmem [shape: f32[1,192], index: 3, kind: input, shape index: {}]   ;;  %s5522_s4 = inlined_call_operand.hbm [shape: bf16[64,64], index: 4, kind: input, shape index: {}]   ;;  %s5523_s5 = inlined_call_operand.vmem [shape: f32[1,64], index: 5, kind: input, shape index: {}]   ;;  %s5524_s6 = inlined_call_operand.hbm [shape: f32[8,16,64], index: 6, kind: output, shape index: {}]  }
   0x1   :  { %13 = vsyncpa [#allocation3 + $0x1], 0 }
   0x2   :  { %14 = vsyncpa [#allocation6], 0 }
   0x3   :  { %15 = vsyncpa [#allocation9], 0 }
   0x4   :  { %16 = vsyncpa [#allocation4], 0 }
   0x5   :  { %18 = vsyncpa [#allocation4 + $0x1], 0  ;;  %s4566_s21 = smov 0   ;;  %s4568_s22 = smov 0  }
   0x6   :  { %s4570_s23 = smov 0   ;;  %s4572_s24 = smov 0  }
   0x7 LB: > { %s4587_s25 = sadd.s32 4294967295, %s4506_s24   ;;  %s3871_s26 = sadd.s32 4294967294, %s4506_s24   ;;  %s4506_s24 = sphi %s4572_s24, %s5546_s24   ;;  %s4502_s23 = sphi %s4570_s23, %s5545_s23   ;;  %s4498_s22 = sphi %s4568_s22, %s5544_s22   ;;  %s4494_s21 = sphi %s4566_s21, %s5543_s21  }
   0x8   : > { %p44_p0 = scmp.ne.s32.totalorder %s4498_s22, %s4494_s21  ;;  %p5525_p1 = scmp.eq.s32.totalorder %s4587_s25, 0 }
   0x9   : > { %p179_p3 = scmp.eq.s32.totalorder %s3871_s26, 3  ;;  %p3872_p5 = scmp.ge.s32.totalorder %s4506_s24, 1 }
   0xa   : > { %p4596_p4 = por %p5525_p1, %p44_p0  ;;  %p186_p7 = scmp.lt.s32.totalorder %s4506_s24, 5 }
   0xb   : > { %p4601_p6 = por %p179_p3, %p44_p0  ;;  %s4508_s30 = smov [#allocation5]  }
   0xc   : > { %s5528_s27 = scalar_select %p4596_p4, 1, 0 }
   0xd   : > { %s5529_s28 = scalar_select %p4601_p6, 1, 0 }
   0xe   : > { %p4606_p8 = pnand %p3872_p5, %p186_p7  ;;  %s198_s7 = sshll.u32 %s4508_s30, 4  ;;  %s4610_s7 = int_to_ptr.vmem [resolvable:$true] %s198_s7 }
   0xf   : > { %s4509_s9 = smov [#allocation7]   ;;  %s4510_s11 = smov [#allocation8]  }
  0x10   : > { %s5530_s29 = scalar_select %p4606_p8, 1, 0 }
  0x11   : > { %p4129_p9 = pneg %p4606_p8  ;;  %s211_s10 = sshll.u32 %s4509_s9, 4  ;;  %s4620_s10 = int_to_ptr.vmem [resolvable:$true] %s211_s10 }
  0x12   : > { %s4622_s12 = sshll.u32 %s4510_s11, 4  ;;  %s4318_s15 = scalar_lea.hbm %s5519_s1, 1024  ;;  %s228_s12 = int_to_ptr.vmem [resolvable:$true] %s4622_s12 }
  0x13   : > { %p4616_p10 = pnand %p4129_p9, %p5525_p1  ;;  %p4319_p11 = scmp.ne.s32.totalorder %s5519_s1, %s4318_s15 }
  0x14   : > { %p4325_p3 = scmp.lt.u32.totalorder %s4318_s15, %s5519_s1 }
  0x15   : > { %p4632_p12 = pneg %p4616_p10 }
  0x17   : > { %p4321_p13 = pnand %p4632_p12, %p4319_p11 }
  0x19   : > { %p4322_p0 = pneg %p4321_p13 }
  0x1b   : > { %p4327_p5 = pnand %p4325_p3, %p4322_p0 }
  0x1d   : > { %4330 = shalt.err (!%p4327_p5)
}
  0x1e   : > { %s4331_s26 = scalar_lea.vmem %s4610_s7, 1024  ;;  %p4339_p2 = scmp.lt.s32.totalorder %s4610_s7, %s4610_s7 }
  0x1f   : > { %p4332_p7 = scmp.ne.s32.totalorder %s4610_s7, %s4331_s26  ;;  %p4340_p6 = scmp.lt.s32.totalorder %s4331_s26, %s4331_s26 }
  0x21   : > { %p4334_p9 = pnand %p4332_p7, %p4632_p12  ;;  %p4341_p11 = por %p4340_p6, %p4339_p2 }
  0x23   : > { %p4335_p1 = pneg %p4334_p9 }
  0x25   : > { %p4342_p13 = pnand %p4341_p11, %p4335_p1 }
  0x27   : > { %4345 = shalt.err (!%p4342_p13)
}
  0x28   : > { %s4511_s30 = smov 128   ;;  %s4512_s9 = smov 8  }
  0x29   : > { %4132 = dma.hbm_to_vmem [thread:$0]  (!%p4616_p10), %s5519_s1, 1024, %s4610_s7, [#allocation6], %s4511_s30, %s4511_s30, %s4512_s9  }
  0x2a   : > { %s4346_s16 = scalar_lea.hbm %s5520_s2, 1024 }
  0x2b   : > { %p4347_p1 = scmp.ne.s32.totalorder %s5520_s2, %s4346_s16  ;;  %p4353_p0 = scmp.lt.u32.totalorder %s4346_s16, %s5520_s2 }
  0x2d   : > { %p4349_p2 = pnand %p4347_p1, %p4632_p12 }
  0x2f   : > { %p4350_p6 = pneg %p4349_p2 }
  0x31   : > { %p4355_p3 = pnand %p4353_p0, %p4350_p6 }
  0x33   : > { %4358 = shalt.err (!%p4355_p3)
}
  0x34   : > { %s4359_s7 = scalar_lea.vmem %s4620_s10, 1024  ;;  %p4367_p11 = scmp.lt.s32.totalorder %s4620_s10, %s4620_s10 }
  0x35   : > { %p4360_p5 = scmp.ne.s32.totalorder %s4620_s10, %s4359_s7  ;;  %p4368_p13 = scmp.lt.s32.totalorder %s4359_s7, %s4359_s7 }
  0x37   : > { %p4362_p7 = pnand %p4360_p5, %p4632_p12  ;;  %p4369_p1 = por %p4368_p13, %p4367_p11 }
  0x39   : > { %p4363_p9 = pneg %p4362_p7 }
  0x3b   : > { %p4370_p2 = pnand %p4369_p1, %p4363_p9 }
  0x3d   : > { %4373 = shalt.err (!%p4370_p2)
}
  0x3e   : > { %4135 = dma.hbm_to_vmem [thread:$0]  (!%p4616_p10), %s5520_s2, 1024, %s4620_s10, [#allocation6], %s4511_s30, %s4511_s30, %s4512_s9  }
  0x3f   : > { %s4374_s16 = scalar_lea.hbm %s5522_s4, 512 }
  0x40   : > { %p4375_p6 = scmp.ne.s32.totalorder %s5522_s4, %s4374_s16  ;;  %p4381_p5 = scmp.lt.u32.totalorder %s4374_s16, %s5522_s4 }
  0x42   : > { %p4377_p0 = pnand %p4375_p6, %p4632_p12 }
  0x44   : > { %p4378_p3 = pneg %p4377_p0 }
  0x46   : > { %p4383_p7 = pnand %p4381_p5, %p4378_p3 }
  0x48   : > { %4386 = shalt.err (!%p4383_p7)
}
  0x49   : > { %s4387_s7 = scalar_lea.vmem %s228_s12, 512  ;;  %p4395_p1 = scmp.lt.s32.totalorder %s228_s12, %s228_s12 }
  0x4a   : > { %p4388_p9 = scmp.ne.s32.totalorder %s228_s12, %s4387_s7  ;;  %p4396_p2 = scmp.lt.s32.totalorder %s4387_s7, %s4387_s7 }
  0x4c   : > { %p4390_p11 = pnand %p4388_p9, %p4632_p12  ;;  %p4397_p4 = por %p4396_p2, %p4395_p1 }
  0x4e   : > { %p4391_p13 = pneg %p4390_p11 }
  0x50   : > { %p4398_p8 = pnand %p4397_p4, %p4391_p13 }
  0x52   : > { %4401 = shalt.err (!%p4398_p8)
}
  0x53   : > { %s4513_s10 = smov 64   ;;  %s4514_s18 = smov 4  }
  0x54   : > { %4138 = dma.hbm_to_vmem [thread:$0]  (!%p4616_p10), %s5522_s4, 512, %s228_s12, [#allocation9], %s4513_s10, %s4513_s10, %s4514_s18  }
  0x55   : > { %s4702_s14 = sadd.s32 1, %s4506_s24   ;;  %s31_s16 = sadd.s32 1, %s4502_s23 }
  0x56   : > { %s28_s15 = ssub.s32 %s4506_s24, %s4702_s14  ;;  %p38_p8 = scmp.ne.s32.totalorder %s4502_s23, %s4498_s22 }
  0x57   : > { %p29_p4 = scmp.eq.s32.totalorder %s28_s15, 0  ;;  %p39_p12 = scmp.eq.s32.totalorder %s4506_s24, 0 }
  0x58   : > { %p4150_p6 = scmp.lt.s32.totalorder %s4506_s24, 4  ;;  %p5533_p3 = scmp.eq.s32.totalorder %s4587_s25, 3 }
  0x59   : > { %s4712_s17 = scalar_select %p29_p4, %s4502_s23, %s31_s16  }
  0x5a   : > { %p40_p0 = por %p39_p12, %p38_p8  ;;  %p4716_p5 = por %p5533_p3, %p38_p8 }
  0x5b   : > { %s244_s8 = sand.u32 1, %s4502_s23   ;;  %s3964_s20 = sshll.u32 %s4506_s24, 9 }
  0x5c   : > { %s3877_s12 = sshll.u32 %s244_s8, 5  ;;  %s4725_s10 = scalar_lea.hbm %s5518_s0, %s3964_s20 }
  0x5d   : > { %s248_s18 = scalar_lea.vmem [#allocation2], %s3877_s12  ;;  %p4727_p10 = pnand %p4150_p6, %p40_p0 }
  0x5e   : > { %s256_s11 = sshll.u32 %s248_s18, 4  ;;  %s4733_s15 = scalar_lea.sflag [#allocation3], %s244_s8  ;;  %s4731_s11 = int_to_ptr.vmem [resolvable:$true] %s256_s11 }
  0x5f   : > { %s4402_s16 = scalar_lea.hbm %s4725_s10, 512  ;;  %p4404_p9 = pneg %p4727_p10 }
  0x60   : > { %p4403_p7 = scmp.ne.s32.totalorder %s4725_s10, %s4402_s16  ;;  %s4407_s26 = scalar_lea.hbm %s5518_s0, 2048 }
  0x61   : > { %p4408_p1 = scmp.lt.u32.totalorder %s4725_s10, %s5518_s0  ;;  %p4409_p2 = scmp.lt.u32.totalorder %s4407_s26, %s4402_s16 }
  0x62   : > { %p4405_p11 = pnand %p4404_p9, %p4403_p7  ;;  %p4411_p8 = scmp.lt.u32.totalorder %s4402_s16, %s4725_s10 }
  0x63   : > { %p4410_p4 = por %p4409_p2, %p4408_p1 }
  0x64   : > { %p4406_p13 = pneg %p4405_p11 }
  0x65   : > { %p4412_p12 = por %p4411_p8, %p4410_p4 }
  0x67   : > { %p4413_p6 = pnand %p4412_p12, %p4406_p13 }
  0x69   : > { %4416 = shalt.err (!%p4413_p6)
}
  0x6a   : > { %s4417_s8 = scalar_lea.vmem %s4731_s11, 512  ;;  %s4515_s20 = smov [#allocation2]  }
  0x6b   : > { %p4418_p0 = scmp.ne.s32.totalorder %s4731_s11, %s4417_s8  ;;  %s4422_s12 = sshll.u32 %s4515_s20, 4  ;;  %s4423_s12 = int_to_ptr.vmem [resolvable:$false] %s4422_s12 }
  0x6c   : > { %s4424_s7 = scalar_lea.vmem %s4423_s12, 1024  ;;  %p4425_p11 = scmp.lt.s32.totalorder %s4731_s11, %s4423_s12 }
  0x6d   : > { %p4420_p3 = pnand %p4418_p0, %p4404_p9  ;;  %p4426_p1 = scmp.lt.s32.totalorder %s4424_s7, %s4417_s8 }
  0x6f   : > { %p4421_p7 = pneg %p4420_p3  ;;  %p4427_p2 = por %p4426_p1, %p4425_p11 }
  0x71   : > { %p4428_p4 = pnand %p4427_p2, %p4421_p7 }
  0x73   : > { %4431 = shalt.err (!%p4428_p4)
}
  0x74   : > { %4142 = dma.hbm_to_vmem [thread:$0]  (!%p4727_p10), %s4725_s10, 512, %s4731_s11, %s4733_s15, %s4511_s30, %s4511_s30, %s4512_s9  }
  0x75   : > { %p5536_p9 = scmp.ne.s32.totalorder %s5530_s29, 0 }
  0x76   : > { %s4767_s16 = sand.u32 (!%p5536_p9), 1, %s4498_s22   ;;  %p5537_p13 = scmp.ne.s32.totalorder (!%p5536_p9), %s5528_s27, 0 }
  0x77   : > { %268 = sbr.rel (%p5536_p9) target bundleno = 1855 (0x73f), region = 44  ;;  %s3882_s26 = sshll.u32 (!%p5536_p9), %s4767_s16, 5 }
  0x78   : > { %s271_s18 = scalar_lea.sflag (!%p5536_p9), [#allocation3], %s4767_s16  ;;  %s4773_s13 = scalar_lea.vmem (!%p5536_p9), [#allocation2], %s3882_s26 }
  0x7e   : > { %4477 = dma.done.wait (%p5537_p13), %s271_s18, 512  }
  0x7f   : > { %4479 = vsyncadd (%p5537_p13), %s271_s18, 4294966784  ;;  %p5538_p10 = scmp.eq.s32.totalorder %s4587_s25, 0 }
  0x81   : > { %4481 = dma.done.wait (%p5538_p10), [#allocation6], 2048   ;;  %p5539_p8 = pmov %p5538_p10 }
  0x83   : > { %4483 = vsyncadd (%p5539_p8), [#allocation6], 4294965248  ;;  %p5540_p12 = pmov %p5539_p8 }
  0x84   : > { %p5541_p6 = pmov %p5539_p8 }
  0x85   : > { %4485 = dma.done.wait (%p5540_p12), [#allocation9], 512  }
  0x86   : > { %4487 = vsyncadd (%p5541_p6), [#allocation9], 4294966784  ;;  %v4516_v0 = vmov 0   ;;  %v4238_v1 = vld [vmem:[#allocation7 + $0x4] ss:$8 sps:$4 sm:$0xff]   ;;  %vm384_vm0 = vcmask 523264   ;;  %v334_v15 = vlaneseq }
  0x87   : > { %423 = vmatprep.mubr.bf16.mxu0 %v4516_v0  ;;  %v4240_v2 = vld [vmem:[#allocation7] ss:$8 sps:$4 sm:$0xff]   ;;  %391 = vmatprep.subr.bf16.mxu0 %v4238_v1  ;;  %v4241_v3 = vld [vmem:[#allocation7 + $0x14] ss:$8 sps:$4 sm:$0xff]   ;;  %v4243_v4 = vld [vmem:[#allocation7 + $0x10] ss:$8 sps:$4 sm:$0xff]   ;;  %v4811_v47 = vpack.i.b16 %v4516_v0, %v4516_v0 }
  0x88   : > { %392 = vmatpush1.bf16.msra.mxu0 %v4240_v2  ;;  %v4244_v5 = vld [vmem:[#allocation7 + $0x24] ss:$8 sps:$4 sm:$0xff]   ;;  %v4246_v6 = vld [vmem:[#allocation7 + $0x20] ss:$8 sps:$4 sm:$0xff]   ;;  %v4247_v7 = vld [vmem:[#allocation7 + $0x34] ss:$8 sps:$4 sm:$0xff]  }
  0x89   : > { %393 = vmatprep.subr.bf16.mxu0 %v4241_v3  ;;  %v4249_v8 = vld [vmem:[#allocation7 + $0x30] ss:$8 sps:$4 sm:$0xff]   ;;  %v318_v9 = vld [vmem:[%s4773_s13] sm:$0xff]  ;;  %v319_v10 = vld [vmem:[%s4773_s13 + $0x8] sm:$0xff]  ;;  %v335_v16 = vshrl.u32 %v334_v15, 7  ;;  %s4517_s30 = smov 80  }
  0x8a   : > { %v322_v11 = vpack.c.bf16 %v319_v10, %v318_v9  ;;  %v320_v12 = vld [vmem:[%s4773_s13 + $0x10] sm:$0xff]  ;;  %v321_v13 = vld [vmem:[%s4773_s13 + $0x18] sm:$0xff]  ;;  %v332_v18 = vld [vmem:[%s5521_s3] sm:$0x3]  ;;  %s4518_s9 = smov 112   ;;  %s4519_s10 = smov 96  }
  0x8b   : > { %v323_v14 = vpack.c.bf16 %v321_v13, %v320_v12  ;;  %v336_v17 = vsub.s32 0, %v335_v16  ;;  %v340_v19 = vsub.s32 1, %v335_v16  ;;  %s4520_s11 = smov 64   ;;  %v4521_v42 = vmov 1983009808   ;;  %s3929_s15 = sshll.u32 %s4587_s25, 1 }
  0x8c   : > { %394 = vmatpush1.bf16.msra.mxu0 %v4243_v4  ;;  %v500_v43 = vunpack.c.l.s4 %v4521_v42  ;;  %v4522_v45 = vmov 1934713408   ;;  %vm4524_vm1 = vmmov 0   ;;  %vm2066_vm2 = vcmask 130048   ;;  %s2445_s8 = ssub.s32 0, %s3929_s15  ;;  %p2444_p0 = scmp.lt.s32.totalorder %s3929_s15, 0 }
  0x8d   : > { %395 = vmatprep.subr.bf16.mxu0 %v4244_v5  ;;  %v337_v20 = vrot.slane %v332_v18, %v336_v17  ;;  %v341_v22 = vrot.slane %v332_v18, %v340_v19  ;;  %v531_v46 = vunpack.c.l.s4 %v4522_v45  ;;  %s3930_s20 = smin.u32 %s3929_s15, %s2445_s8  ;;  %s4525_s29 = smov 16  }
  0x8e   : > { %v501_v44 = vunpack.c.0.s8 %v500_v43  ;;  %s2447_s12 = sand.u32 3, %s3930_s20   ;;  %s314_s15 = scalar_lea.vmem [#allocation10], %s3882_s26 }
  0x8f   : > { %v532_v53 = vunpack.c.0.s8 %v531_v46  ;;  %s2448_s7 = ssub.s32 0, %s2447_s12  ;;  %s3767_s8 = sshll.u32 %s314_s15, 4  ;;  %s5466_s8 = int_to_ptr.vmem [resolvable:$true] %s3767_s8 }
  0x90   : > { %396 = vmatpush1.bf16.msra.mxu0 %v4246_v6  ;;  %v4814_v52 = vsub.s32 %v501_v44, %v335_v16  ;;  %s5548_s7 = smov (!%p2444_p0, %s2448_s7), %s2447_s12  ;;  %s3966_s20 = sshll.u32 %s4587_s25, 9 }
  0x91   : > { %397 = vmatprep.subr.bf16.mxu0 %v4247_v7  ;;  %v4820_v62 = vsub.s32 %v532_v53, %v335_v16  ;;  %p3932_p3 = scmp.lt.s32.totalorder %s5548_s7, 0  ;;  %s2454_s18 = sadd.s32 4, %s5548_s7 }
  0x92   : > { %s3753_s25 = scalar_lea.sflag [#allocation4], %s4767_s16 }
  0x93   : > { %s5550_s18 = smov (!%p3932_p3, %s2454_s18), %s5548_s7  ;;  %s5472_s7 = scalar_lea.hbm %s5524_s6, %s3966_s20 }
  0x94   : > { %398 = vmatpush1.bf16.msra.mxu0 %v4249_v8  ;;  %s3933_s13 = sshll.u32 %s5550_s18, 4  ;;  %s4432_s18 = scalar_lea.vmem %s5466_s8, 512 }
  0x95   : > { %s5077_s27 = scalar_lea.vmem [#allocation5], %s3933_s13  ;;  %p4433_p7 = scmp.ne.s32.totalorder %s5466_s8, %s4432_s18 }
  0x96   : > { %s4528_s13 = smov [#allocation10]  }
  0x97   : > { %3895 = vmatmul.mubr.msk.bf16.vlgmr.msra.gmra.mrb[0].mxu0 %vm384_vm0, %v322_v11  ;;  %p4434_p11 = pnand %p4433_p7, %p4716_p5 }
  0x98   : > { %433 = vmatprep.mubr.bf16.mxu0 %v4516_v0 }
  0x99   : > { %p4435_p1 = pneg %p4434_p11 }
  0x9f   : > { %3896 = vmatmul.mubr.msk.bf16.gmra.mrb[4].mxu0 %vm384_vm0, %v323_v14 }
 0x16a   : > { %v425_v21 = vpop.f32.mrb[0].mxu0 }
 0x16b   : > { %v427_v23 = vpop.f32.mrb[1].mxu0  ;;  %v426_v25 = vadd.f32 %v425_v21, %v337_v20 }
 0x16c   : > { %v429_v24 = vpop.f32.mrb[2].mxu0  ;;  %v428_v28 = vadd.f32 %v427_v23, %v341_v22 }
 0x16d   : > { %v430_v26 = vadd.f32 %v429_v24, %v337_v20  ;;  %v431_v27 = vpop.f32.mrb[3].mxu0 }
 0x16e   : > { %v432_v29 = vadd.f32 %v431_v27, %v341_v22 }
 0x16f   : > { %v444_v30 = vpack.c.bf16 %v430_v26, %v426_v25 }
 0x170   : > { %v4798_v31 = vpack.c.bf16 %v432_v29, %v428_v28 }
 0x171   : > { %456 = vrot.lane.b32.xlu1 %v444_v30, %s4517_s30  ;;  %448 = vrot.lane.b32.xlu0 %v444_v30, %s4518_s9  ;;  %v464_v50 = vshrl.u32 %v444_v30, 16 }
 0x172   : > { %v435_v32 = vpop.f32.mrb[4].mxu0 }
 0x173   : > { %v436_v33 = vadd.f32 %v435_v32, %v337_v20  ;;  %v437_v34 = vpop.f32.mrb[5].mxu0 }
 0x174   : > { %v438_v35 = vadd.f32 %v437_v34, %v341_v22  ;;  %v439_v36 = vpop.f32.mrb[6].mxu0 }
 0x175   : > { %v440_v37 = vadd.f32 %v439_v36, %v337_v20  ;;  %452 = vrot.lane.b32.xlu0 %v444_v30, %s4519_s10  ;;  %v441_v38 = vpop.f32.mrb[7].mxu0 }
 0x176   : > { %v442_v39 = vadd.f32 %v441_v38, %v341_v22 }
 0x177   : > { %v445_v40 = vpack.c.bf16 %v440_v37, %v436_v33 }
 0x178   : > { %v4803_v41 = vpack.c.bf16 %v442_v39, %v438_v35 }
 0x179   : > { %450 = vrot.lane.b32.xlu1 %v445_v40, %s4518_s9  ;;  %454 = vrot.lane.b32.xlu0 %v445_v40, %s4519_s10  ;;  %v486_v5 = vshrl.u32 %v445_v40, 16 }
 0x17d   : > { %458 = vrot.lane.b32.xlu1 %v445_v40, %s4517_s30  ;;  %986 = vrot.lane.b32.xlu0 %v444_v30, %s4520_s11 }
 0x1e3   : > { %v449_v48 = vpop.permute.xlu0 %448  ;;  %v457_v54 = vpop.permute.xlu1 %456 }
 0x1e4   : > { %v462_v49 = vpack.i.b16 %v449_v48, %v444_v30  ;;  %v465_v51 = vshrl.u32 %v449_v48, 16  ;;  %990 = vrot.lane.b32.xlu1 %v449_v48, %s4520_s11  ;;  %v473_v60 = vshrl.u32 %v457_v54, 16 }
 0x1e6   : > { %v466_v55 = vpack.i.b16 %v465_v51, %v464_v50  ;;  %v498_v56 = vcombine.high %v462_v49, %v4811_v47  ;;  %v505_v63 = vrot.slane %v462_v49, %v4814_v52 }
 0x1e7   : > { %v453_v57 = vpop.permute.xlu0 %452 }
 0x1e8   : > { %v564_v58 = vcombine.high %v466_v55, %v4811_v47  ;;  %v470_v59 = vpack.i.b16 %v457_v54, %v453_v57  ;;  %998 = vrot.lane.b32.xlu1 %v457_v54, %s4520_s11  ;;  %v472_v61 = vshrl.u32 %v453_v57, 16  ;;  %994 = vrot.lane.b32.xlu0 %v453_v57, %s4520_s11  ;;  %v512_v2 = vrot.slane %v498_v56, %v4814_v52 }
 0x1e9   : > { %v571_v3 = vrot.slane %v466_v55, %v4814_v52 }
 0x1ea   : > { %v513_v0 = vcombine.high %v470_v59, %v4811_v47  ;;  %v520_v1 = vrot.slane %v470_v59, %v4814_v52  ;;  %v474_v4 = vpack.i.b16 %v473_v60, %v472_v61  ;;  %v578_v7 = vrot.slane %v564_v58, %v4814_v52 }
 0x1eb   : > { %v451_v6 = vpop.permute.xlu1 %450  ;;  %v455_v28 = vpop.permute.xlu0 %454  ;;  %v4523_v58 = vmov 0.0  }
 0x1ec   : > { %v527_v8 = vrot.slane %v513_v0, %v4814_v52  ;;  %v528_v9 = vcombine.low %v505_v63, %v520_v1  ;;  %v529_v10 = vcombine.high %v505_v63, %v520_v1  ;;  %992 = vrot.lane.b32.xlu1 %v451_v6, %s4520_s11  ;;  %v579_v11 = vcombine.high %v474_v4, %v4811_v47 }
 0x1ed   : > { %v586_v12 = vrot.slane %v474_v4, %v4814_v52  ;;  %v484_v13 = vpack.i.b16 %v451_v6, %v445_v40  ;;  %v487_v14 = vshrl.u32 %v451_v6, 16  ;;  %988 = vrot.lane.b32.xlu0 %v445_v40, %s4520_s11  ;;  %v494_v36 = vshrl.u32 %v455_v28, 16  ;;  %4005 = vmatprep.subr.bf16.mxu1 %v4523_v58 }
 0x1ee   : > { %v536_v15 = vrot.slane %v528_v9, %v4820_v62  ;;  %v543_v16 = vrot.slane %v529_v10, %v4820_v62  ;;  %v544_v17 = vcombine.low %v512_v2, %v527_v8  ;;  %v545_v18 = vcombine.high %v512_v2, %v527_v8  ;;  %4023 = vmatprep.subr.bf16.mxu0 %v4523_v58 }
 0x1ef   : > { %v593_v19 = vrot.slane %v579_v11, %v4814_v52  ;;  %v594_v20 = vcombine.low %v571_v3, %v586_v12  ;;  %v595_v21 = vcombine.high %v571_v3, %v586_v12  ;;  %v488_v22 = vpack.i.b16 %v487_v14, %v486_v5  ;;  %v459_v23 = vpop.permute.xlu1 %458  ;;  %4007 = vmatprep.mubr.msk.bf16.mxu1 %vm4524_vm1, %v4523_v58 }
 0x1f0   : > { %v552_v24 = vrot.slane %v544_v17, %v4820_v62  ;;  %v559_v25 = vrot.slane %v545_v18, %v4820_v62  ;;  %v762_v26 = vcombine.low %v536_v15, %v543_v16  ;;  %v3897_v27 = vcombine.high %v536_v15, %v543_v16  ;;  %1000 = vrot.lane.b32.xlu1 %v459_v23, %s4520_s11 }
 0x1f1   : > { %v4840_v29 = vrot.slane %v594_v20, %v4820_v62  ;;  %v4843_v30 = vrot.slane %v595_v21, %v4820_v62  ;;  %v610_v32 = vcombine.low %v578_v7, %v593_v19  ;;  %v611_v33 = vcombine.high %v578_v7, %v593_v19  ;;  %996 = vrot.lane.b32.xlu0 %v455_v28, %s4520_s11 }
 0x1f2   : > { %v778_v34 = vcombine.low %v552_v24, %v559_v25  ;;  %v3898_v35 = vcombine.high %v552_v24, %v559_v25  ;;  %v769_v42 = vrot.slane %v762_v26, %v4814_v52  ;;  %v777_v43 = vrot.slane %v3897_v27, %v4814_v52  ;;  %4025 = vmatprep.mubr.msk.bf16.mxu0 %vm4524_vm1, %v4523_v58 }
 0x1f3   : > { %v4847_v37 = vrot.slane %v610_v32, %v4820_v62  ;;  %v4850_v38 = vrot.slane %v611_v33, %v4820_v62  ;;  %v812_v39 = vcombine.low %v4840_v29, %v4843_v30  ;;  %v3899_v40 = vcombine.high %v4840_v29, %v4843_v30 }
 0x1f4   : > { %v630_v44 = vcombine.high %v484_v13, %v4811_v47  ;;  %v696_v45 = vcombine.high %v488_v22, %v4811_v47  ;;  %v492_v49 = vpack.i.b16 %v459_v23, %v455_v28  ;;  %v495_v50 = vshrl.u32 %v459_v23, 16 }
 0x1f5   : > { %v828_v46 = vcombine.low %v4847_v37, %v4850_v38  ;;  %v3900_v48 = vcombine.high %v4847_v37, %v4850_v38  ;;  %v637_v51 = vrot.slane %v484_v13, %v4814_v52  ;;  %v703_v54 = vrot.slane %v488_v22, %v4814_v52 }
 0x1f6   : > { %v644_v53 = vrot.slane %v630_v44, %v4814_v52  ;;  %v496_v55 = vpack.i.b16 %v495_v50, %v494_v36  ;;  %v645_v56 = vcombine.high %v492_v49, %v4811_v47  ;;  %v652_v57 = vrot.slane %v492_v49, %v4814_v52 }
 0x1f7   : > { %v710_v59 = vrot.slane %v696_v45, %v4814_v52  ;;  %v785_v60 = vrot.slane %v778_v34, %v4814_v52  ;;  %v793_v61 = vrot.slane %v3898_v35, %v4814_v52  ;;  %v794_v63 = vcombine.low %v769_v42, %v777_v43 }
 0x1f8   : > { %v659_v0 = vrot.slane %v645_v56, %v4814_v52  ;;  %v660_v1 = vcombine.low %v637_v51, %v652_v57  ;;  %v661_v2 = vcombine.high %v637_v51, %v652_v57  ;;  %v711_v3 = vcombine.high %v496_v55, %v4811_v47 }
 0x1f9   : > { %v718_v4 = vrot.slane %v496_v55, %v4814_v52  ;;  %v801_v5 = vrot.slane %v794_v63, %v4820_v62  ;;  %v802_v6 = vcombine.low %v785_v60, %v793_v61  ;;  %v819_v7 = vrot.slane %v812_v39, %v4814_v52 }
 0x1fa   : > { %v668_v8 = vrot.slane %v660_v1, %v4820_v62  ;;  %v675_v9 = vrot.slane %v661_v2, %v4820_v62  ;;  %v676_v10 = vcombine.low %v644_v53, %v659_v0  ;;  %v677_v11 = vcombine.high %v644_v53, %v659_v0 }
 0x1fb   : > { %v725_v12 = vrot.slane %v711_v3, %v4814_v52  ;;  %v726_v13 = vcombine.low %v703_v54, %v718_v4  ;;  %v727_v14 = vcombine.high %v703_v54, %v718_v4  ;;  %v809_v15 = vrot.slane %v802_v6, %v4820_v62 }
 0x1fc   : > { %v684_v16 = vrot.slane %v676_v10, %v4820_v62  ;;  %v691_v17 = vrot.slane %v677_v11, %v4820_v62  ;;  %v862_v18 = vcombine.low %v668_v8, %v675_v9  ;;  %v3901_v19 = vcombine.high %v668_v8, %v675_v9 }
 0x1fd   : > { %v734_v20 = vrot.slane %v726_v13, %v4820_v62  ;;  %v741_v21 = vrot.slane %v727_v14, %v4820_v62  ;;  %v742_v22 = vcombine.low %v710_v59, %v725_v12  ;;  %v743_v23 = vcombine.high %v710_v59, %v725_v12 }
 0x1fe   : > { %v869_v24 = vrot.slane %v862_v18, %v4814_v52  ;;  %v877_v25 = vrot.slane %v3901_v19, %v4814_v52  ;;  %v878_v26 = vcombine.low %v684_v16, %v691_v17  ;;  %v3902_v27 = vcombine.high %v684_v16, %v691_v17 }
 0x1ff   : > { %v750_v28 = vrot.slane %v742_v22, %v4820_v62  ;;  %v757_v29 = vrot.slane %v743_v23, %v4820_v62  ;;  %v912_v30 = vcombine.low %v734_v20, %v741_v21  ;;  %v3903_v32 = vcombine.high %v734_v20, %v741_v21  ;;  %v987_v21 = vpop.permute.xlu0 %986 }
 0x200   : > { %v885_v33 = vrot.slane %v878_v26, %v4814_v52  ;;  %v893_v34 = vrot.slane %v3902_v27, %v4814_v52  ;;  %v894_v35 = vcombine.low %v869_v24, %v877_v25  ;;  %v827_v36 = vrot.slane %v3899_v40, %v4814_v52 }
 0x201   : > { %v919_v39 = vrot.slane %v912_v30, %v4814_v52  ;;  %v927_v42 = vrot.slane %v3903_v32, %v4814_v52  ;;  %v928_v43 = vcombine.low %v750_v28, %v757_v29  ;;  %v3904_v44 = vcombine.high %v750_v28, %v757_v29 }
 0x202   : > { %v902_v45 = vcombine.low %v885_v33, %v893_v34  ;;  %v4896_v49 = vcombine.low %v801_v5, %v809_v15  ;;  %v4902_v54 = vcombine.high %v801_v5, %v809_v15  ;;  %v835_v40 = vrot.slane %v828_v46, %v4814_v52 }
 0x203   : > { %v935_v50 = vrot.slane %v928_v43, %v4814_v52  ;;  %v943_v51 = vrot.slane %v3904_v44, %v4814_v52  ;;  %v944_v53 = vcombine.low %v919_v39, %v927_v42  ;;  %v843_v55 = vrot.slane %v3900_v48, %v4814_v52 }
 0x204   : > { %v844_v56 = vcombine.low %v819_v7, %v827_v36  ;;  %v901_v57 = vrot.slane %v894_v35, %v4820_v62  ;;  %v909_v60 = vrot.slane %v902_v45, %v4820_v62  ;;  %v965_v48 = vshrl.u32 %v4896_v49, 16 }
 0x205   : > { %v952_v59 = vcombine.low %v935_v50, %v943_v51  ;;  %v852_v61 = vcombine.low %v835_v40, %v843_v55  ;;  %v951_v0 = vrot.slane %v944_v53, %v4820_v62  ;;  %v971_v2 = vshrl.u32 %v4902_v54, 16 }
 0x206   : > { %v4916_v63 = vcombine.low %v901_v57, %v909_v60  ;;  %v4920_v1 = vcombine.high %v901_v57, %v909_v60  ;;  %v851_v37 = vrot.slane %v844_v56, %v4820_v62  ;;  %v1006_v23 = vshrl.u32 %v987_v21, 16 }
 0x207   : > { %v959_v46 = vrot.slane %v952_v59, %v4820_v62  ;;  %v859_v38 = vrot.slane %v852_v61, %v4820_v62 }
 0x208   : > { %v977_v7 = vshrl.u32 %v4916_v63, 16  ;;  %v983_v8 = vshrl.u32 %v4920_v1, 16 }
 0x209   : > { %v4926_v3 = vcombine.low %v951_v0, %v959_v46  ;;  %v4928_v4 = vcombine.high %v951_v0, %v959_v46  ;;  %v4930_v5 = vcombine.low %v851_v37, %v859_v38  ;;  %v4932_v6 = vcombine.high %v851_v37, %v859_v38 }
 0x20b   : > { %v978_v9 = vshrl.u32 %v4926_v3, 16  ;;  %v984_v10 = vshrl.u32 %v4928_v4, 16  ;;  %v976_v11 = vpack.i.b16 %v4926_v3, %v4916_v63  ;;  %v982_v12 = vpack.i.b16 %v4928_v4, %v4920_v1  ;;  %v2458_v63 = vld [vmem:[%s5077_s27] sm:$0xff]  ;;  %v2459_v3 = vld [vmem:[%s5077_s27 + $0x8] sm:$0xff] }
 0x20c   : > { %v964_v13 = vpack.i.b16 %v4930_v5, %v4896_v49  ;;  %v966_v14 = vshrl.u32 %v4930_v5, 16  ;;  %v972_v15 = vshrl.u32 %v4932_v6, 16  ;;  %v970_v16 = vpack.i.b16 %v4932_v6, %v4902_v54 }
 0x20d   : > { %v4948_v17 = vpack.i.b16 %v978_v9, %v977_v7  ;;  %v4950_v18 = vpack.i.b16 %v984_v10, %v983_v8 }
 0x20e   : > { %v4952_v19 = vpack.i.b16 %v972_v15, %v971_v2  ;;  %v4954_v20 = vpack.i.b16 %v966_v14, %v965_v48 }
 0x256   : > { %v991_v22 = vpop.permute.xlu1 %990 }
 0x257   : > { %v1004_v24 = vpack.i.b16 %v991_v22, %v987_v21  ;;  %v1007_v25 = vshrl.u32 %v991_v22, 16 }
 0x259   : > { %v1008_v26 = vpack.i.b16 %v1007_v25, %v1006_v23  ;;  %v1034_v28 = vcombine.high %v1004_v24, %v4811_v47  ;;  %v1041_v35 = vrot.slane %v1004_v24, %v4814_v52 }
 0x25a   : > { %v999_v27 = vpop.permute.xlu1 %998  ;;  %v995_v30 = vpop.permute.xlu0 %994 }
 0x25b   : > { %v1015_v29 = vshrl.u32 %v999_v27, 16  ;;  %v1012_v32 = vpack.i.b16 %v999_v27, %v995_v30  ;;  %v1014_v33 = vshrl.u32 %v995_v30, 16  ;;  %v1100_v34 = vcombine.high %v1008_v26, %v4811_v47 }
 0x25c   : > { %v1048_v44 = vrot.slane %v1034_v28, %v4814_v52  ;;  %v1107_v45 = vrot.slane %v1008_v26, %v4814_v52 }
 0x25d   : > { %v1016_v36 = vpack.i.b16 %v1015_v29, %v1014_v33  ;;  %v1049_v39 = vcombine.high %v1012_v32, %v4811_v47  ;;  %v1056_v42 = vrot.slane %v1012_v32, %v4814_v52  ;;  %v1114_v57 = vrot.slane %v1100_v34, %v4814_v52 }
 0x25e   : > { %v993_v43 = vpop.permute.xlu1 %992 }
 0x25f   : > { %v1023_v50 = vshrl.u32 %v993_v43, 16  ;;  %v989_v51 = vpop.permute.xlu0 %988  ;;  %v1063_v53 = vrot.slane %v1049_v39, %v4814_v52  ;;  %v1064_v40 = vcombine.low %v1041_v35, %v1056_v42  ;;  %v1065_v55 = vcombine.high %v1041_v35, %v1056_v42 }
 0x260   : > { %v1115_v56 = vcombine.high %v1016_v36, %v4811_v47  ;;  %v1122_v59 = vrot.slane %v1016_v36, %v4814_v52  ;;  %v1020_v60 = vpack.i.b16 %v993_v43, %v989_v51  ;;  %v1022_v61 = vshrl.u32 %v989_v51, 16 }
 0x261   : > { %v1072_v0 = vrot.slane %v1064_v40, %v4820_v62  ;;  %v1079_v46 = vrot.slane %v1065_v55, %v4820_v62  ;;  %v1080_v37 = vcombine.low %v1048_v44, %v1063_v53  ;;  %v1081_v38 = vcombine.high %v1048_v44, %v1063_v53 }
 0x262   : > { %v1129_v48 = vrot.slane %v1115_v56, %v4814_v52  ;;  %v1130_v2 = vcombine.low %v1107_v45, %v1122_v59  ;;  %v1131_v7 = vcombine.high %v1107_v45, %v1122_v59  ;;  %v1024_v8 = vpack.i.b16 %v1023_v50, %v1022_v61  ;;  %v1001_v25 = vpop.permute.xlu1 %1000 }
 0x263   : > { %v1088_v9 = vrot.slane %v1080_v37, %v4820_v62  ;;  %v1095_v10 = vrot.slane %v1081_v38, %v4820_v62  ;;  %v1298_v14 = vcombine.low %v1072_v0, %v1079_v46  ;;  %v3905_v15 = vcombine.high %v1072_v0, %v1079_v46  ;;  %v997_v29 = vpop.permute.xlu0 %996 }
 0x264   : > { %v1138_v21 = vrot.slane %v1130_v2, %v4820_v62  ;;  %v1145_v22 = vrot.slane %v1131_v7, %v4820_v62  ;;  %v1146_v23 = vcombine.low %v1114_v57, %v1129_v48  ;;  %v1147_v24 = vcombine.high %v1114_v57, %v1129_v48 }
 0x265   : > { %v1314_v26 = vcombine.low %v1088_v9, %v1095_v10  ;;  %v3906_v27 = vcombine.high %v1088_v9, %v1095_v10  ;;  %v1166_v28 = vcombine.high %v1020_v60, %v4811_v47  ;;  %v1173_v32 = vrot.slane %v1020_v60, %v4814_v52 }
 0x266   : > { %v1154_v30 = vrot.slane %v1146_v23, %v4820_v62  ;;  %v1161_v33 = vrot.slane %v1147_v24, %v4820_v62  ;;  %v1348_v34 = vcombine.low %v1138_v21, %v1145_v22  ;;  %v1232_v35 = vcombine.high %v1024_v8, %v4811_v47 }
 0x267   : > { %v1031_v36 = vshrl.u32 %v1001_v25, 16  ;;  %v1028_v39 = vpack.i.b16 %v1001_v25, %v997_v29  ;;  %v1030_v42 = vshrl.u32 %v997_v29, 16  ;;  %v1305_v43 = vrot.slane %v1298_v14, %v4814_v52 }
 0x268   : > { %v1313_v44 = vrot.slane %v3905_v15, %v4814_v52  ;;  %v3907_v45 = vcombine.high %v1138_v21, %v1145_v22  ;;  %v1180_v50 = vrot.slane %v1166_v28, %v4814_v52  ;;  %v1321_v51 = vrot.slane %v1314_v26, %v4814_v52 }
 0x269   : > { %v1329_v53 = vrot.slane %v3906_v27, %v4814_v52  ;;  %v1239_v40 = vrot.slane %v1024_v8, %v4814_v52  ;;  %v1032_v55 = vpack.i.b16 %v1031_v36, %v1030_v42  ;;  %v1181_v56 = vcombine.high %v1028_v39, %v4811_v47 }
 0x26a   : > { %v1188_v57 = vrot.slane %v1028_v39, %v4814_v52  ;;  %v1246_v59 = vrot.slane %v1232_v35, %v4814_v52  ;;  %v1330_v60 = vcombine.low %v1305_v43, %v1313_v44  ;;  %v1355_v61 = vrot.slane %v1348_v34, %v4814_v52 }
 0x26b   : > { %v1364_v0 = vcombine.low %v1154_v30, %v1161_v33  ;;  %v1195_v46 = vrot.slane %v1181_v56, %v4814_v52  ;;  %v1247_v48 = vcombine.high %v1032_v55, %v4811_v47  ;;  %v1254_v2 = vrot.slane %v1032_v55, %v4814_v52 }
 0x26c   : > { %v1196_v37 = vcombine.low %v1173_v32, %v1188_v57  ;;  %v1197_v38 = vcombine.high %v1173_v32, %v1188_v57  ;;  %v1338_v7 = vcombine.low %v1321_v51, %v1329_v53  ;;  %v1363_v8 = vrot.slane %v3907_v45, %v4814_v52 }
 0x26d   : > { %v3908_v9 = vcombine.high %v1154_v30, %v1161_v33  ;;  %v1212_v15 = vcombine.low %v1180_v50, %v1195_v46  ;;  %v1213_v21 = vcombine.high %v1180_v50, %v1195_v46  ;;  %v1261_v22 = vrot.slane %v1247_v48, %v4814_v52 }
 0x26e   : > { %v1204_v10 = vrot.slane %v1196_v37, %v4820_v62  ;;  %v1211_v14 = vrot.slane %v1197_v38, %v4820_v62  ;;  %v1262_v23 = vcombine.low %v1239_v40, %v1254_v2  ;;  %v1263_v24 = vcombine.high %v1239_v40, %v1254_v2 }
 0x26f   : > { %v1371_v25 = vrot.slane %v1364_v0, %v4814_v52  ;;  %v1220_v26 = vrot.slane %v1212_v15, %v4820_v62  ;;  %v1227_v27 = vrot.slane %v1213_v21, %v4820_v62  ;;  %v1278_v33 = vcombine.low %v1246_v59, %v1261_v22 }
 0x270   : > { %v1398_v28 = vcombine.low %v1204_v10, %v1211_v14  ;;  %v3909_v29 = vcombine.high %v1204_v10, %v1211_v14  ;;  %v1270_v30 = vrot.slane %v1262_v23, %v4820_v62  ;;  %v1277_v32 = vrot.slane %v1263_v24, %v4820_v62 }
 0x271   : > { %v1279_v34 = vcombine.high %v1246_v59, %v1261_v22  ;;  %v1414_v39 = vcombine.low %v1220_v26, %v1227_v27  ;;  %v3910_v42 = vcombine.high %v1220_v26, %v1227_v27  ;;  %v1286_v43 = vrot.slane %v1278_v33, %v4820_v62 }
 0x272   : > { %v1405_v35 = vrot.slane %v1398_v28, %v4814_v52  ;;  %v1413_v36 = vrot.slane %v3909_v29, %v4814_v52  ;;  %v1448_v45 = vcombine.low %v1270_v30, %v1277_v32  ;;  %v3911_v50 = vcombine.high %v1270_v30, %v1277_v32 }
 0x273   : > { %v1293_v44 = vrot.slane %v1279_v34, %v4820_v62  ;;  %v1421_v51 = vrot.slane %v1414_v39, %v4814_v52  ;;  %v1429_v53 = vrot.slane %v3910_v42, %v4814_v52  ;;  %v1345_v40 = vrot.slane %v1338_v7, %v4820_v62 }
 0x274   : > { %v1379_v55 = vrot.slane %v3908_v9, %v4814_v52  ;;  %v1455_v56 = vrot.slane %v1448_v45, %v4814_v52  ;;  %v1463_v57 = vrot.slane %v3911_v50, %v4814_v52  ;;  %v1337_v46 = vrot.slane %v1330_v60, %v4820_v62 }
 0x275   : > { %v1464_v59 = vcombine.low %v1286_v43, %v1293_v44  ;;  %v3912_v0 = vcombine.high %v1286_v43, %v1293_v44  ;;  %v1380_v37 = vcombine.low %v1355_v61, %v1363_v8  ;;  %v1430_v48 = vcombine.low %v1405_v35, %v1413_v36 }
 0x276   : > { %v1388_v38 = vcombine.low %v1371_v25, %v1379_v55  ;;  %v1438_v2 = vcombine.low %v1421_v51, %v1429_v53  ;;  %v1347_v15 = vcombine.high %v1337_v46, %v1345_v40  ;;  %v1480_v21 = vcombine.low %v1455_v56, %v1463_v57 }
 0x277   : > { %v1471_v10 = vrot.slane %v1464_v59, %v4814_v52  ;;  %v1479_v14 = vrot.slane %v3912_v0, %v4814_v52  ;;  %v1387_v7 = vrot.slane %v1380_v37, %v4820_v62  ;;  %v1346_v24 = vcombine.low %v1337_v46, %v1345_v40 }
 0x278   : > { %v1395_v9 = vrot.slane %v1388_v38, %v4820_v62  ;;  %v1445_v22 = vrot.slane %v1438_v2, %v4820_v62  ;;  %v1437_v61 = vrot.slane %v1430_v48, %v4820_v62  ;;  %v1487_v8 = vrot.slane %v1480_v21, %v4820_v62 }
 0x279   : > { %v1488_v23 = vcombine.low %v1471_v10, %v1479_v14  ;;  %v1507_v28 = vshrl.u32 %v1347_v15, 16  ;;  %v1501_v39 = vshrl.u32 %v1346_v24, 16 }
 0x27a   : > { %v1396_v26 = vcombine.low %v1387_v7, %v1395_v9  ;;  %v1397_v60 = vcombine.high %v1387_v7, %v1395_v9  ;;  %v1446_v30 = vcombine.low %v1437_v61, %v1445_v22  ;;  %v1447_v40 = vcombine.high %v1437_v61, %v1445_v22 }
 0x27b   : > { %v1495_v25 = vrot.slane %v1488_v23, %v4820_v62 }
 0x27c   : > { %v1500_v27 = vpack.i.b16 %v1396_v26, %v1346_v24  ;;  %v1508_v29 = vshrl.u32 %v1397_v60, 16  ;;  %v1502_v33 = vshrl.u32 %v1396_v26, 16  ;;  %v1513_v43 = vshrl.u32 %v1446_v30, 16 }
 0x27d   : > { %v1496_v32 = vcombine.low %v1487_v8, %v1495_v25  ;;  %v1497_v50 = vcombine.high %v1487_v8, %v1495_v25  ;;  %v1506_v49 = vpack.i.b16 %v1397_v60, %v1347_v15  ;;  %v1519_v5 = vshrl.u32 %v1447_v40, 16  ;;  %v5090_v15 = vld [vmem:[%s5077_s27 + $0x10] sm:$0xff] }
 0x27e   : > { %v2071_v34 = vsel %vm2066_vm2, %v1500_v27, 0  ;;  %v1509_v35 = vpack.i.b16 %v1508_v29, %v1507_v28  ;;  %v1503_v44 = vpack.i.b16 %v1502_v33, %v1501_v39 }
 0x27f   : > { %4006 = vmatpush3.bf16.xpose.msra.mxu1 %v2071_v34  ;;  %v1514_v36 = vshrl.u32 %v1496_v32, 16  ;;  %v1520_v55 = vshrl.u32 %v1497_v50, 16  ;;  %v2165_v56 = vsel %vm2066_vm2, %v1506_v49, 0  ;;  %v1512_v57 = vpack.i.b16 %v1496_v32, %v1446_v30 }
 0x280   : > { %v2212_v42 = vsel %vm2066_vm2, %v1509_v35, 0  ;;  %4011 = vmatprep.subr.bf16.mxu1 %v4523_v58  ;;  %v2118_v51 = vsel %vm2066_vm2, %v1503_v44, 0  ;;  %v2461_v35 = vld [vmem:[%s5077_s27 + $0x18] sm:$0xff]  ;;  %s4436_s27 = sshll.u32 %s4528_s13, 4  ;;  %s4437_s27 = int_to_ptr.vmem [resolvable:$false] %s4436_s27 }
 0x281   : > { %4024 = vmatpush3.bf16.xpose.msra.mxu0 %v2212_v42  ;;  %v1515_v45 = vpack.i.b16 %v1514_v36, %v1513_v43  ;;  %p4439_p2 = scmp.lt.s32.totalorder %s5466_s8, %s4437_s27 }
 0x282   : > { %4035 = vmatprep.subr.bf16.mxu0 %v4523_v58 }
 0x283   : > { %v2306_v53 = vsel %vm2066_vm2, %v1515_v45, 0 }
 0x286   : > { %4008 = vmatmul.mubr.msk.bf16.vlgmr.msra.gmra.mrb[0].mxu1 %vm2066_vm2, %v964_v13  ;;  %v1521_v13 = vpack.i.b16 %v1520_v55, %v1519_v5 }
 0x287   : > { %4012 = vmatpush3.bf16.xpose.msra.mxu1 %v2118_v51  ;;  %4013 = vmatprep.mubr.msk.bf16.mxu1 %vm4524_vm1, %v4523_v58 }
 0x288   : > { %4026 = vmatmul.mubr.msk.bf16.vlgmr.msra.gmra.mrb[8].mxu0 %vm2066_vm2, %v4952_v19  ;;  %4017 = vmatprep.subr.bf16.mxu1 %v4523_v58  ;;  %v2400_v19 = vsel %vm2066_vm2, %v1521_v13, 0 }
 0x289   : > { %4036 = vmatpush3.bf16.xpose.msra.mxu0 %v2306_v53  ;;  %4037 = vmatprep.mubr.msk.bf16.mxu0 %vm4524_vm1, %v4523_v58 }
 0x28a   : > { %4047 = vmatprep.subr.bf16.mxu0 %v4523_v58 }
 0x28e   : > { %4014 = vmatmul.mubr.msk.bf16.vlgmr.msra.gmra.mrb[4].mxu1 %vm2066_vm2, %v4954_v20  ;;  %v2259_v20 = vsel %vm2066_vm2, %v1512_v57, 0 }
 0x28f   : > { %4018 = vmatpush3.bf16.xpose.msra.mxu1 %v2165_v56  ;;  %4019 = vmatprep.mubr.msk.bf16.mxu1 %vm4524_vm1, %v4523_v58 }
 0x290   : > { %4038 = vmatmul.mubr.msk.bf16.vlgmr.msra.gmra.mrb[12].mxu0 %vm2066_vm2, %v4948_v17  ;;  %4029 = vmatprep.subr.bf16.mxu1 %v4523_v58  ;;  %v1518_v17 = vpack.i.b16 %v1497_v50, %v1447_v40 }
 0x291   : > { %4048 = vmatpush3.bf16.xpose.msra.mxu0 %v2400_v19  ;;  %4049 = vmatprep.mubr.msk.bf16.mxu0 %vm4524_vm1, %v4523_v58 }
 0x292   : > { %4059 = vmatprep.subr.bf16.mxu0 %v4523_v58  ;;  %v2353_v54 = vsel %vm2066_vm2, %v1518_v17, 0 }
 0x296   : > { %4020 = vmatmul.mubr.msk.bf16.vlgmr.msra.gmra.mrb[8].mxu1 %vm2066_vm2, %v970_v16 }
 0x297   : > { %4030 = vmatpush3.bf16.xpose.msra.mxu1 %v2259_v20  ;;  %4031 = vmatprep.mubr.msk.bf16.mxu1 %vm4524_vm1, %v4523_v58 }
 0x298   : > { %4050 = vmatmul.mubr.msk.bf16.vlgmr.msra.gmra.mrb[16].mxu0 %vm2066_vm2, %v4950_v18  ;;  %4041 = vmatprep.subr.bf16.mxu1 %v4523_v58 }
 0x299   : > { %4061 = vmatprep.mubr.msk.bf16.mxu0 %vm4524_vm1, %v4523_v58 }
 0x29e   : > { %4032 = vmatmul.mubr.msk.bf16.vlgmr.msra.gmra.mrb[12].mxu1 %vm2066_vm2, %v976_v11 }
 0x29f   : > { %4042 = vmatpush3.bf16.xpose.msra.mxu1 %v2353_v54  ;;  %4043 = vmatprep.mubr.msk.bf16.mxu1 %vm4524_vm1, %v4523_v58 }
 0x2a0   : > { %4053 = vmatprep.subr.bf16.mxu1 %v4523_v58 }
 0x2a6   : > { %4044 = vmatmul.mubr.msk.bf16.vlgmr.msra.gmra.mrb[16].mxu1 %vm2066_vm2, %v982_v12 }
 0x2a7   : > { %4055 = vmatprep.mubr.msk.bf16.mxu1 %vm4524_vm1, %v4523_v58 }
 0x359   : > { %v2107_v1 = vpop.f32.mrb[0].mxu1 }
 0x35a   : > { %v2462_v4 = vmul.f32 %v2458_v63, %v2107_v1  ;;  %v4009_v6 = vpop.f32.mrb[1].mxu1 }
 0x35b   : > { %v2110_v11 = vpop.f32.mrb[2].mxu1  ;;  %v2248_v12 = vpop.f32.mrb[8].mxu0 }
 0x35c   : > { %v2463_v16 = vmul.f32 %v2459_v3, %v2110_v11  ;;  %v2468_v18 = vmul.f32 %v2458_v63, %v2248_v12  ;;  %v4010_v59 = vpop.f32.mrb[3].mxu1  ;;  %v4027_v0 = vpop.f32.mrb[9].mxu0  ;;  %vm2478_vm3 = vcmp.eq.f32.partialorder %v2462_v4, 0.0 }
 0x35d   : > { %v2251_v46 = vpop.f32.mrb[10].mxu0  ;;  %v5081_v37 = vsel %vm2478_vm3, -10000.0, %v2462_v4 }
 0x35e   : > { %v4028_v38 = vpop.f32.mrb[11].mxu0  ;;  %v2510_v48 = vsel %vm2066_vm2, %v5081_v37, -inf  ;;  %vm2479_vm4 = vcmp.eq.f32.partialorder %v2463_v16, 0.0  ;;  %vm2484_vm5 = vcmp.eq.f32.partialorder %v2468_v18, 0.0  ;;  %v2469_v22 = vmul.f32 %v2459_v3, %v2251_v46 }
 0x35f   : > { %2511 = vmax.xlane.f32.xlu0 %v2510_v48  ;;  %v5085_v2 = vsel %vm2479_vm4, -10000.0, %v2463_v16  ;;  %v5092_v7 = vsel %vm2484_vm5, -10000.0, %v2468_v18 }
 0x360   : > { %v2513_v10 = vsel %vm2066_vm2, %v5085_v2, -inf  ;;  %v2528_v25 = vsel %vm2066_vm2, %v5092_v7, -inf  ;;  %vm2485_vm9 = vcmp.eq.f32.partialorder %v2469_v22, 0.0 }
 0x361   : > { %2514 = vmax.xlane.f32.xlu1 %v2513_v10  ;;  %v2154_v14 = vpop.f32.mrb[4].mxu1  ;;  %v5110_v50 = vsel %vm2485_vm9, -10000.0, %v2469_v22 }
 0x362   : > { %v2464_v9 = vmul.f32 %v2458_v63, %v2154_v14  ;;  %v4015_v21 = vpop.f32.mrb[5].mxu1  ;;  %v2531_v19 = vsel %vm2066_vm2, %v5110_v50, -inf }
 0x363   : > { %v2157_v23 = vpop.f32.mrb[6].mxu1  ;;  %v2342_v24 = vpop.f32.mrb[12].mxu0 }
 0x364   : > { %v2465_v26 = vmul.f32 %v2459_v3, %v2157_v23  ;;  %v2472_v60 = vmul.f32 %v5090_v15, %v2342_v24  ;;  %v4016_v61 = vpop.f32.mrb[7].mxu1  ;;  %v4039_v8 = vpop.f32.mrb[13].mxu0  ;;  %vm2480_vm6 = vcmp.eq.f32.partialorder %v2464_v9, 0.0 }
 0x365   : > { %v2345_v27 = vpop.f32.mrb[14].mxu0  ;;  %2529 = vmax.xlane.f32.xlu1 %v2528_v25  ;;  %v5097_v28 = vsel %vm2480_vm6, -10000.0, %v2464_v9  ;;  %vm3647_vm6 = vcmask 392192  }
 0x366   : > { %v4040_v29 = vpop.f32.mrb[15].mxu0  ;;  %v2516_v30 = vsel %vm2066_vm2, %v5097_v28, -inf  ;;  %vm2488_vm7 = vcmp.eq.f32.partialorder %v2472_v60, 0.0  ;;  %vm2481_vm8 = vcmp.eq.f32.partialorder %v2465_v26, 0.0  ;;  %v2473_v51 = vmul.f32 %v2461_v35, %v2345_v27 }
 0x367   : > { %2517 = vmax.xlane.f32.xlu0 %v2516_v30  ;;  %v5101_v32 = vsel %vm2488_vm7, -10000.0, %v2472_v60  ;;  %v5103_v33 = vsel %vm2481_vm8, -10000.0, %v2465_v26 }
 0x368   : > { %v2540_v34 = vsel %vm2066_vm2, %v5101_v32, -inf  ;;  %v2519_v43 = vsel %vm2066_vm2, %v5103_v33, -inf  ;;  %vm2489_vm13 = vcmp.eq.f32.partialorder %v2473_v51, 0.0 }
 0x369   : > { %2541 = vmax.xlane.f32.xlu1 %v2540_v34  ;;  %v2201_v36 = vpop.f32.mrb[8].mxu1  ;;  %v5128_v11 = vsel %vm2489_vm13, -10000.0, %v2473_v51 }
 0x36a   : > { %v2466_v39 = vmul.f32 %v2458_v63, %v2201_v36  ;;  %v4021_v42 = vpop.f32.mrb[9].mxu1  ;;  %v2543_v0 = vsel %vm2066_vm2, %v5128_v11, -inf }
 0x36b   : > { %v2436_v44 = vpop.f32.mrb[16].mxu0  ;;  %2520 = vmax.xlane.f32.xlu0 %v2519_v43  ;;  %v2204_v45 = vpop.f32.mrb[10].mxu1 }
 0x36c   : > { %v2476_v53 = vmul.f32 %v5090_v15, %v2436_v44  ;;  %v2467_v40 = vmul.f32 %v2459_v3, %v2204_v45  ;;  %v4022_v55 = vpop.f32.mrb[11].mxu1  ;;  %v4051_v49 = vpop.f32.mrb[17].mxu0  ;;  %vm2482_vm10 = vcmp.eq.f32.partialorder %v2466_v39, 0.0 }
 0x36d   : > { %v2439_v5 = vpop.f32.mrb[18].mxu0  ;;  %v5113_v13 = vsel %vm2482_vm10, -10000.0, %v2466_v39 }
 0x36e   : > { %v4052_v56 = vpop.f32.mrb[19].mxu0  ;;  %v2522_v57 = vsel %vm2066_vm2, %v5113_v13, -inf  ;;  %vm2492_vm11 = vcmp.eq.f32.partialorder %v2476_v53, 0.0  ;;  %vm2483_vm12 = vcmp.eq.f32.partialorder %v2467_v40, 0.0  ;;  %v2477_v12 = vmul.f32 %v2461_v35, %v2439_v5 }
 0x36f   : > { %2532 = vmax.xlane.f32.xlu0 %v2531_v19  ;;  %2523 = vmax.xlane.f32.xlu1 %v2522_v57  ;;  %v5119_v20 = vsel %vm2492_vm11, -10000.0, %v2476_v53  ;;  %v5121_v17 = vsel %vm2483_vm12, -10000.0, %v2467_v40 }
 0x370   : > { %v2552_v3 = vsel %vm2066_vm2, %v5119_v20, -inf  ;;  %v2525_v4 = vsel %vm2066_vm2, %v5121_v17, -inf  ;;  %vm2493_vm3 = vcmp.eq.f32.partialorder %v2477_v12, 0.0 }
 0x371   : > { %v2295_v54 = vpop.f32.mrb[12].mxu1  ;;  %v5141_v22 = vsel %vm2493_vm3, -10000.0, %v2477_v12 }
 0x372   : > { %v2470_v63 = vmul.f32 %v5090_v15, %v2295_v54  ;;  %v4033_v1 = vpop.f32.mrb[13].mxu1  ;;  %v2555_v26 = vsel %vm2066_vm2, %v5141_v22, -inf }
 0x373   : > { %2553 = vmax.xlane.f32.xlu1 %v2552_v3  ;;  %2526 = vmax.xlane.f32.xlu0 %v2525_v4  ;;  %v2298_v6 = vpop.f32.mrb[14].mxu1 }
 0x374   : > { %v2471_v16 = vmul.f32 %v2461_v35, %v2298_v6  ;;  %v4034_v18 = vpop.f32.mrb[15].mxu1  ;;  %vm2486_vm14 = vcmp.eq.f32.partialorder %v2470_v63, 0.0 }
 0x375   : > { %v5130_v59 = vsel %vm2486_vm14, -10000.0, %v2470_v63 }
 0x376   : > { %v2534_v46 = vsel %vm2066_vm2, %v5130_v59, -inf  ;;  %vm2487_vm15 = vcmp.eq.f32.partialorder %v2471_v16, 0.0 }
 0x377   : > { %2544 = vmax.xlane.f32.xlu0 %v2543_v0  ;;  %2535 = vmax.xlane.f32.xlu1 %v2534_v46  ;;  %v5136_v38 = vsel %vm2487_vm15, -10000.0, %v2471_v16 }
 0x378   : > { %v2537_v9 = vsel %vm2066_vm2, %v5136_v38, -inf }
 0x379   : > { %v2389_v48 = vpop.f32.mrb[16].mxu1 }
 0x37a   : > { %v2474_v10 = vmul.f32 %v5090_v15, %v2389_v48  ;;  %v4045_v14 = vpop.f32.mrb[17].mxu1 }
 0x37b   : > { %2538 = vmax.xlane.f32.xlu0 %v2537_v9  ;;  %v2392_v21 = vpop.f32.mrb[18].mxu1 }
 0x37c   : > { %v2475_v23 = vmul.f32 %v2461_v35, %v2392_v21  ;;  %v4046_v24 = vpop.f32.mrb[19].mxu1  ;;  %vm2490_vm5 = vcmp.eq.f32.partialorder %v2474_v10, 0.0 }
 0x37d   : > { %v5155_v61 = vsel %vm2490_vm5, -10000.0, %v2474_v10 }
 0x37e   : > { %vm2491_vm4 = vcmp.eq.f32.partialorder %v2475_v23, 0.0  ;;  %v2546_v8 = vsel %vm2066_vm2, %v5155_v61, -inf }
 0x37f   : > { %2556 = vmax.xlane.f32.xlu0 %v2555_v26  ;;  %v5145_v60 = vsel %vm2491_vm4, -10000.0, %v2475_v23 }
 0x380   : > { %v2549_v15 = vsel %vm2066_vm2, %v5145_v60, -inf }
 0x383   : > { %2550 = vmax.xlane.f32.xlu0 %v2549_v15 }
 0x388   : > { %1526 = vrot.lane.b32.xlu1 %v4798_v31, %s4518_s9 }
 0x399   : > { %1530 = vrot.lane.b32.xlu0 %v4798_v31, %s4519_s10 }
 0x39d   : > { %1528 = vrot.lane.b32.xlu0 %v4803_v41, %s4518_s9  ;;  %s4527_s9 = smov 48  }
 0x3ac   : > { %2547 = vmax.xlane.f32.xlu1 %v2546_v8 }
 0x3bd   : > { %1534 = vrot.lane.b32.xlu1 %v4798_v31, %s4517_s30 }
 0x3c1   : > { %1532 = vrot.lane.b32.xlu1 %v4803_v41, %s4519_s10 }
 0x3ec   : > { %v2512_v25 = vpop.xlane.xlu0 %2511 }
 0x3ed   : > { %v2558_v27 = vsub.f32 %v5081_v37, %v2512_v25 }
 0x3ee   : > { %v2515_v29 = vpop.xlane.xlu1 %2514 }
 0x3ef   : > { %v2574_v30 = vmul.f32 1.442695, %v2558_v27  ;;  %v2559_v34 = vsub.f32 %v5085_v2, %v2515_v29 }
 0x3f1   : > { %4254 = vpow2.f32 %v2574_v30  ;;  %v2576_v35 = vmul.f32 1.442695, %v2559_v34 }
 0x3f2   : > { %v2530_v36 = vpop.xlane.xlu1 %2529 }
 0x3f3   : > { %4256 = vpow2.f32 %v2576_v35  ;;  %v2564_v39 = vsub.f32 %v5092_v7, %v2530_v36 }
 0x3f4   : > { %v2518_v42 = vpop.xlane.xlu0 %2517 }
 0x3f5   : > { %v2586_v43 = vmul.f32 1.442695, %v2564_v39  ;;  %v2560_v44 = vsub.f32 %v5097_v28, %v2518_v42 }
 0x3f6   : > { %v2542_v51 = vpop.xlane.xlu1 %2541 }
 0x3f7   : > { %4258 = vpow2.f32 %v2586_v43  ;;  %v2578_v45 = vmul.f32 1.442695, %v2560_v44  ;;  %v2568_v7 = vsub.f32 %v5101_v32, %v2542_v51 }
 0x3f8   : > { %v2521_v53 = vpop.xlane.xlu0 %2520 }
 0x3f9   : > { %4260 = vpow2.f32 %v2578_v45  ;;  %v2561_v40 = vsub.f32 %v5103_v33, %v2521_v53  ;;  %v2594_v4 = vmul.f32 1.442695, %v2568_v7 }
 0x3fb   : > { %v5167_v37 = vpop.eup %4254  ;;  %v2580_v57 = vmul.f32 1.442695, %v2561_v40 }
 0x3fc   : > { %v2533_v2 = vpop.xlane.xlu0 %2532  ;;  %v2524_v55 = vpop.xlane.xlu1 %2523  ;;  %v2606_v49 = vsel %vm2066_vm2, %v5167_v37, 0.0 }
 0x3fd   : > { %v5172_v5 = vpop.eup %4256  ;;  %v2565_v28 = vsub.f32 %v5110_v50, %v2533_v2  ;;  %v2562_v56 = vsub.f32 %v5113_v13, %v2524_v55  ;;  %2607 = vadd.xlane.f32.xlu1 %v2606_v49  ;;  %v1542_v55 = vshrl.u32 %v4798_v31, 16 }
 0x3fe   : > { %v2609_v19 = vsel %vm2066_vm2, %v5172_v5, 0.0 }
 0x3ff   : > { %v2588_v54 = vmul.f32 1.442695, %v2565_v28  ;;  %v2582_v33 = vmul.f32 1.442695, %v2562_v56  ;;  %2610 = vadd.xlane.f32.xlu0 %v2609_v19 }
 0x400   : > { %v5179_v63 = vpop.xlane.xlu1 %2553  ;;  %v2527_v1 = vpop.xlane.xlu0 %2526 }
 0x401   : > { %v5181_v3 = vpop.eup %4258  ;;  %4262 = vpow2.f32 %v2588_v54  ;;  %v2563_v32 = vsub.f32 %v5121_v17, %v2527_v1  ;;  %v2572_v56 = vsub.f32 %v5119_v20, %v5179_v63 }
 0x402   : > { %4264 = vpow2.f32 %v2582_v33  ;;  %v2624_v50 = vsel %vm2066_vm2, %v5181_v3, 0.0 }
 0x403   : > { %v5186_v13 = vpop.eup %4260  ;;  %4266 = vpow2.f32 %v2580_v57  ;;  %v2584_v6 = vmul.f32 1.442695, %v2563_v32  ;;  %2625 = vadd.xlane.f32.xlu0 %v2624_v50  ;;  %v2602_v50 = vmul.f32 1.442695, %v2572_v56 }
 0x404   : > { %v2545_v12 = vpop.xlane.xlu0 %2544  ;;  %v2536_v16 = vpop.xlane.xlu1 %2535  ;;  %4268 = vpow2.f32 %v2594_v4  ;;  %v2612_v46 = vsel %vm2066_vm2, %v5186_v13, 0.0 }
 0x405   : > { %v2569_v18 = vsub.f32 %v5128_v11, %v2545_v12  ;;  %v2566_v0 = vsub.f32 %v5130_v59, %v2536_v16  ;;  %4270 = vpow2.f32 %v2584_v6 }
 0x407   : > { %v2596_v17 = vmul.f32 1.442695, %v2569_v18  ;;  %2613 = vadd.xlane.f32.xlu0 %v2612_v46  ;;  %v2590_v10 = vmul.f32 1.442695, %v2566_v0 }
 0x408   : > { %v2539_v48 = vpop.xlane.xlu0 %2538  ;;  %v1527_v53 = vpop.permute.xlu1 %1526 }
 0x409   : > { %4272 = vpow2.f32 %v2596_v17  ;;  %v2567_v51 = vsub.f32 %v5136_v38, %v2539_v48  ;;  %v1543_v2 = vshrl.u32 %v1527_v53, 16  ;;  %v1540_v49 = vpack.i.b16 %v1527_v53, %v4798_v31 }
 0x40a   : > { %4274 = vpow2.f32 %v2590_v10 }
 0x40b   : > { %v5192_v14 = vpop.eup %4262  ;;  %v2592_v40 = vmul.f32 1.442695, %v2567_v51  ;;  %v1544_v19 = vpack.i.b16 %v1543_v2, %v1542_v55  ;;  %v1570_v33 = vcombine.high %v1540_v49, %v4811_v47  ;;  %v1577_v6 = vrot.slane %v1540_v49, %v4814_v52 }
 0x40c   : > { %v5194_v9 = vpop.eup %4264  ;;  %v2557_v21 = vpop.xlane.xlu0 %2556  ;;  %v2627_v23 = vsel %vm2066_vm2, %v5192_v14, 0.0 }
 0x40d   : > { %v5198_v11 = vpop.eup %4266  ;;  %2628 = vadd.xlane.f32.xlu1 %v2627_v23  ;;  %v2618_v59 = vsel %vm2066_vm2, %v5194_v9, 0.0  ;;  %v2573_v26 = vsub.f32 %v5141_v22, %v2557_v21  ;;  %v1636_v31 = vcombine.high %v1544_v19, %v4811_v47  ;;  %v1584_v63 = vrot.slane %v1570_v33, %v4814_v52 }
 0x40e   : > { %v5202_v24 = vpop.eup %4268  ;;  %2619 = vadd.xlane.f32.xlu0 %v2618_v59  ;;  %v2615_v8 = vsel %vm2066_vm2, %v5198_v11, 0.0  ;;  %v1643_v48 = vrot.slane %v1544_v19, %v4814_v52 }
 0x40f   : > { %v5207_v25 = vpop.eup %4270  ;;  %v2636_v29 = vsel %vm2066_vm2, %v5202_v24, 0.0  ;;  %v2604_v34 = vmul.f32 1.442695, %v2573_v26  ;;  %v1650_v10 = vrot.slane %v1636_v31, %v4814_v52 }
 0x410   : > { %v2551_v15 = vpop.xlane.xlu0 %2550  ;;  %v2621_v22 = vsel %vm2066_vm2, %v5207_v25, 0.0 }
 0x411   : > { %v2571_v27 = vsub.f32 %v5145_v60, %v2551_v15  ;;  %2616 = vadd.xlane.f32.xlu1 %v2615_v8 }
 0x412   : > { %2637 = vadd.xlane.f32.xlu0 %v2636_v29 }
 0x413   : > { %v5212_v30 = vpop.eup %4272  ;;  %v2600_v35 = vmul.f32 1.442695, %v2571_v27 }
 0x414   : > { %v2639_v36 = vsel %vm2066_vm2, %v5212_v30, 0.0  ;;  %v5218_v39 = vpop.eup %4274  ;;  %v1531_v57 = vpop.permute.xlu0 %1530 }
 0x415   : > { %4276 = vpow2.f32 %v2600_v35  ;;  %2622 = vadd.xlane.f32.xlu1 %v2621_v22  ;;  %v2630_v60 = vsel %vm2066_vm2, %v5218_v39, 0.0  ;;  %v1550_v1 = vshrl.u32 %v1531_v57, 16 }
 0x416   : > { %4278 = vpow2.f32 %v2604_v34  ;;  %2640 = vadd.xlane.f32.xlu0 %v2639_v36 }
 0x417   : > { %4280 = vpow2.f32 %v2592_v40 }
 0x41a   : > { %2631 = vadd.xlane.f32.xlu0 %v2630_v60 }
 0x41f   : > { %v5222_v42 = vpop.eup %4276 }
 0x420   : > { %v2645_v43 = vsel %vm2066_vm2, %v5222_v42, 0.0  ;;  %v5226_v44 = vpop.eup %4278 }
 0x421   : > { %2646 = vadd.xlane.f32.xlu0 %v2645_v43  ;;  %v2651_v45 = vsel %vm2066_vm2, %v5226_v44, 0.0  ;;  %v5244_v16 = vpop.eup %4280 }
 0x422   : > { %v2633_v34 = vsel %vm2066_vm2, %v5244_v16, 0.0 }
 0x425   : > { %2652 = vadd.xlane.f32.xlu0 %v2651_v45 }
 0x426   : > { %1536 = vrot.lane.b32.xlu1 %v4803_v41, %s4517_s30  ;;  %s4526_s30 = smov 32  }
 0x439   : > { %v2548_v7 = vpop.xlane.xlu1 %2547 }
 0x43a   : > { %v2570_v28 = vsub.f32 %v5155_v61, %v2548_v7 }
 0x43c   : > { %v2598_v54 = vmul.f32 1.442695, %v2570_v28 }
 0x43d   : > { %v1535_v38 = vpop.permute.xlu1 %1534 }
 0x43e   : > { %v1548_v4 = vpack.i.b16 %v1535_v38, %v1531_v57  ;;  %v1551_v32 = vshrl.u32 %v1535_v38, 16  ;;  %4282 = vpow2.f32 %v2598_v54 }
 0x43f   : > { %4284 = vpow2.f32 %v2602_v50 }
 0x440   : > { %v1552_v12 = vpack.i.b16 %v1551_v32, %v1550_v1  ;;  %v1585_v61 = vcombine.high %v1548_v4, %v4811_v47  ;;  %v1592_v20 = vrot.slane %v1548_v4, %v4814_v52 }
 0x442   : > { %v1599_v18 = vrot.slane %v1585_v61, %v4814_v52  ;;  %v1600_v0 = vcombine.low %v1577_v6, %v1592_v20  ;;  %v1601_v46 = vcombine.high %v1577_v6, %v1592_v20  ;;  %v1651_v17 = vcombine.high %v1552_v12, %v4811_v47 }
 0x443   : > { %v1658_v21 = vrot.slane %v1552_v12, %v4814_v52 }
 0x444   : > { %v1608_v23 = vrot.slane %v1600_v0, %v4820_v62  ;;  %v1615_v59 = vrot.slane %v1601_v46, %v4820_v62  ;;  %v1616_v26 = vcombine.low %v1584_v63, %v1599_v18  ;;  %v1617_v15 = vcombine.high %v1584_v63, %v1599_v18 }
 0x445   : > { %v1665_v8 = vrot.slane %v1651_v17, %v4814_v52  ;;  %v1666_v27 = vcombine.low %v1643_v48, %v1658_v21  ;;  %v1667_v29 = vcombine.high %v1643_v48, %v1658_v21 }
 0x446   : > { %v1624_v35 = vrot.slane %v1616_v26, %v4820_v62  ;;  %v1631_v22 = vrot.slane %v1617_v15, %v4820_v62  ;;  %v1834_v36 = vcombine.low %v1608_v23, %v1615_v59  ;;  %v3913_v60 = vcombine.high %v1608_v23, %v1615_v59 }
 0x447   : > { %v1674_v43 = vrot.slane %v1666_v27, %v4820_v62  ;;  %v1681_v45 = vrot.slane %v1667_v29, %v4820_v62  ;;  %v1682_v51 = vcombine.low %v1650_v10, %v1665_v8  ;;  %v1683_v53 = vcombine.high %v1650_v10, %v1665_v8 }
 0x448   : > { %v1841_v40 = vrot.slane %v1834_v36, %v4814_v52  ;;  %v1849_v2 = vrot.slane %v3913_v60, %v4814_v52  ;;  %v1850_v55 = vcombine.low %v1624_v35, %v1631_v22  ;;  %v3914_v49 = vcombine.high %v1624_v35, %v1631_v22  ;;  %v5264_v57 = vpop.eup %4282  ;;  %v1533_v60 = vpop.permute.xlu1 %1532 }
 0x449   : > { %v1690_v7 = vrot.slane %v1682_v51, %v4820_v62  ;;  %v1697_v28 = vrot.slane %v1683_v53, %v4820_v62  ;;  %v1884_v56 = vcombine.low %v1674_v43, %v1681_v45  ;;  %v3915_v19 = vcombine.high %v1674_v43, %v1681_v45  ;;  %v5270_v31 = vpop.eup %4284  ;;  %v1529_v43 = vpop.permute.xlu0 %1528 }
 0x44a   : > { %v1857_v54 = vrot.slane %v1850_v55, %v4814_v52  ;;  %v1865_v33 = vrot.slane %v3914_v49, %v4814_v52  ;;  %2634 = vadd.xlane.f32.xlu1 %v2633_v34  ;;  %v1866_v38 = vcombine.low %v1841_v40, %v1849_v2  ;;  %v2642_v12 = vsel %vm2066_vm2, %v5264_v57, 0.0 }
 0x44b   : > { %v1891_v1 = vrot.slane %v1884_v56, %v4814_v52  ;;  %v1899_v4 = vrot.slane %v3915_v19, %v4814_v52  ;;  %v1900_v32 = vcombine.low %v1690_v7, %v1697_v28  ;;  %v3916_v50 = vcombine.high %v1690_v7, %v1697_v28 }
 0x44c   : > { %v1874_v6 = vcombine.low %v1857_v54, %v1865_v33  ;;  %v1873_v18 = vrot.slane %v1866_v38, %v4820_v62  ;;  %v2648_v10 = vsel %vm2066_vm2, %v5270_v31, 0.0  ;;  %v1559_v19 = vshrl.u32 %v1529_v43, 16 }
 0x44d   : > { %v1907_v61 = vrot.slane %v1900_v32, %v4814_v52  ;;  %v1915_v20 = vrot.slane %v3916_v50, %v4814_v52  ;;  %v1916_v63 = vcombine.low %v1891_v1, %v1899_v4 }
 0x44e   : > { %2643 = vadd.xlane.f32.xlu1 %v2642_v12  ;;  %v1881_v0 = vrot.slane %v1874_v6, %v4820_v62 }
 0x44f   : > { %v1924_v46 = vcombine.low %v1907_v61, %v1915_v20  ;;  %v1923_v21 = vrot.slane %v1916_v63, %v4820_v62  ;;  %v1566_v61 = vshrl.u32 %v1533_v60, 16 }
 0x450   : > { %v1882_v17 = vcombine.low %v1873_v18, %v1881_v0  ;;  %v1883_v48 = vcombine.high %v1873_v18, %v1881_v0 }
 0x451   : > { %v1931_v23 = vrot.slane %v1924_v46, %v4820_v62 }
 0x452   : > { %2649 = vadd.xlane.f32.xlu1 %v2648_v10  ;;  %v2038_v15 = vshrl.u32 %v1882_v17, 16  ;;  %v2046_v8 = vshrl.u32 %v1883_v48, 16 }
 0x453   : > { %v1932_v59 = vcombine.low %v1923_v21, %v1931_v23  ;;  %v1933_v26 = vcombine.high %v1923_v21, %v1931_v23 }
 0x455   : > { %v2036_v27 = vpack.i.b16 %v1932_v59, %v1882_v17  ;;  %v2039_v29 = vshrl.u32 %v1932_v59, 16  ;;  %v2044_v34 = vpack.i.b16 %v1933_v26, %v1883_v48  ;;  %v2047_v35 = vshrl.u32 %v1933_v26, 16 }
 0x457   : > { %4054 = vmatpush3.bf16.msra.mxu1 %v2036_v27  ;;  %v2040_v22 = vpack.i.b16 %v2039_v29, %v2038_v15  ;;  %v5282_v36 = vpack.i.b16 %v2047_v35, %v2046_v8 }
 0x458   : > { %4065 = vmatprep.subr.bf16.mxu1 %v4523_v58 }
 0x459   : > { %4060 = vmatpush3.bf16.msra.mxu0 %v2040_v22 }
 0x45a   : > { %4071 = vmatprep.subr.bf16.mxu0 %v4523_v58 }
 0x48a   : > { %v2608_v45 = vpop.xlane.xlu1 %2607 }
 0x48b   : > { %4286 = vrcp.f32 %v2608_v45 }
 0x48c   : > { %v2611_v51 = vpop.xlane.xlu0 %2610 }
 0x48d   : > { %4288 = vrcp.f32 %v2611_v51 }
 0x490   : > { %v2626_v53 = vpop.xlane.xlu0 %2625 }
 0x491   : > { %4290 = vrcp.f32 %v2626_v53 }
 0x494   : > { %v2614_v7 = vpop.xlane.xlu0 %2613 }
 0x495   : > { %v4287_v40 = vpop.eup %4286  ;;  %4292 = vrcp.f32 %v2614_v7 }
 0x496   : > { %v2670_v55 = vmul.f32 %v4287_v40, %v5167_v37  ;;  %v1558_v37 = vshrl.u32 %v4803_v41, 16 }
 0x497   : > { %v4289_v2 = vpop.eup %4288 }
 0x498   : > { %v2671_v49 = vmul.f32 %v4289_v2, %v5172_v5  ;;  %v1556_v5 = vpack.i.b16 %v1529_v43, %v4803_v41  ;;  %v1560_v38 = vpack.i.b16 %v1559_v19, %v1558_v37 }
 0x49a   : > { %v2629_v28 = vpop.xlane.xlu1 %2628  ;;  %v2686_v56 = vpack.c.bf16 %v2671_v49, %v2670_v55  ;;  %v1702_v4 = vcombine.high %v1556_v5, %v4811_v47  ;;  %v1768_v50 = vcombine.high %v1560_v38, %v4811_v47  ;;  %v1709_v0 = vrot.slane %v1556_v5, %v4814_v52 }
 0x49b   : > { %4294 = vrcp.f32 %v2629_v28  ;;  %v2620_v33 = vpop.xlane.xlu0 %2619  ;;  %v4291_v32 = vpop.eup %4290  ;;  %v1775_v21 = vrot.slane %v1560_v38, %v4814_v52 }
 0x49c   : > { %4056 = vmatmul.mubr.msk.bf16.vlgmr.msra.gmra.mrb[20].mxu1 %vm2066_vm2, %v2686_v56  ;;  %v1716_v41 = vrot.slane %v1702_v4, %v4814_v52  ;;  %v1782_v23 = vrot.slane %v1768_v50, %v4814_v52  ;;  %v2676_v22 = vmul.f32 %v4291_v32, %v5181_v3 }
 0x49d   : > { %4066 = vmatpush3.bf16.msra.mxu1 %v2044_v34  ;;  %4067 = vmatprep.mubr.msk.bf16.mxu1 %vm4524_vm1, %v4523_v58 }
 0x49e   : > { %v2617_v54 = vpop.xlane.xlu1 %2616  ;;  %4077 = vmatprep.subr.bf16.mxu1 %v4523_v58 }
 0x49f   : > { %4296 = vrcp.f32 %v2617_v54  ;;  %v4293_v12 = vpop.eup %4292  ;;  %v2638_v15 = vpop.xlane.xlu0 %2637 }
 0x4a0   : > { %4298 = vrcp.f32 %v2620_v33  ;;  %v2672_v59 = vmul.f32 %v4293_v12, %v5186_v13 }
 0x4a2   : > { %v2623_v1 = vpop.xlane.xlu1 %2622 }
 0x4a3   : > { %4300 = vrcp.f32 %v2623_v1  ;;  %v2641_v19 = vpop.xlane.xlu0 %2640 }
 0x4a4   : > { %4302 = vrcp.f32 %v2641_v19 }
 0x4a5   : > { %v4295_v18 = vpop.eup %4294  ;;  %4304 = vrcp.f32 %v2638_v15 }
 0x4a6   : > { %v1537_v6 = vpop.permute.xlu1 %1536 }
 0x4a7   : > { %v1564_v20 = vpack.i.b16 %v1537_v6, %v1533_v60  ;;  %v1567_v63 = vshrl.u32 %v1537_v6, 16  ;;  %v2677_v60 = vmul.f32 %v4295_v18, %v5192_v14 }
 0x4a9   : > { %v4297_v46 = vpop.eup %4296  ;;  %v1568_v17 = vpack.i.b16 %v1567_v63, %v1566_v61  ;;  %v1717_v48 = vcombine.high %v1564_v20, %v4811_v47  ;;  %v1724_v10 = vrot.slane %v1564_v20, %v4814_v52  ;;  %v2689_v18 = vpack.c.bf16 %v2677_v60, %v2676_v22 }
 0x4aa   : > { %v2673_v26 = vmul.f32 %v4297_v46, %v5198_v11  ;;  %v4299_v35 = vpop.eup %4298 }
 0x4ab   : > { %v1731_v8 = vrot.slane %v1717_v48, %v4814_v52  ;;  %v1732_v27 = vcombine.low %v1709_v0, %v1724_v10  ;;  %v1733_v29 = vcombine.high %v1709_v0, %v1724_v10  ;;  %v1783_v34 = vcombine.high %v1568_v17, %v4811_v47 }
 0x4ac   : > { %v1790_v43 = vrot.slane %v1568_v17, %v4814_v52  ;;  %v2687_v45 = vpack.c.bf16 %v2673_v26, %v2672_v59  ;;  %v2674_v56 = vmul.f32 %v4299_v35, %v5194_v9 }
 0x4ad   : > { %v4301_v51 = vpop.eup %4300  ;;  %v1740_v13 = vrot.slane %v1732_v27, %v4820_v62  ;;  %v1747_v11 = vrot.slane %v1733_v29, %v4820_v62  ;;  %v1748_v53 = vcombine.low %v1716_v41, %v1731_v8  ;;  %v1749_v40 = vcombine.high %v1716_v41, %v1731_v8 }
 0x4ae   : > { %v2675_v2 = vmul.f32 %v4301_v51, %v5207_v25  ;;  %v1797_v55 = vrot.slane %v1783_v34, %v4814_v52  ;;  %v1798_v47 = vcombine.low %v1775_v21, %v1790_v43  ;;  %v1799_v49 = vcombine.high %v1775_v21, %v1790_v43  ;;  %4062 = vmatmul.mubr.msk.bf16.vlgmr.msra.gmra.mrb[20].mxu0 %vm2066_vm2, %v2687_v45  ;;  %v4303_v29 = vpop.eup %4302 }
 0x4af   : > { %v1756_v3 = vrot.slane %v1748_v53, %v4820_v62  ;;  %v1763_v14 = vrot.slane %v1749_v40, %v4820_v62  ;;  %v1934_v7 = vcombine.low %v1740_v13, %v1747_v11  ;;  %v3917_v28 = vcombine.high %v1740_v13, %v1747_v11  ;;  %4072 = vmatpush3.bf16.msra.mxu0 %v5282_v36  ;;  %v4305_v22 = vpop.eup %4304 }
 0x4b0   : > { %v1806_v54 = vrot.slane %v1798_v47, %v4820_v62  ;;  %v1813_v25 = vrot.slane %v1799_v49, %v4820_v62  ;;  %v1814_v33 = vcombine.low %v1782_v23, %v1797_v55  ;;  %4073 = vmatprep.mubr.msk.bf16.mxu0 %vm4524_vm1, %v4523_v58  ;;  %v1815_v37 = vcombine.high %v1782_v23, %v1797_v55 }
 0x4b1   : > { %v1941_v5 = vrot.slane %v1934_v7, %v4814_v52  ;;  %v1949_v38 = vrot.slane %v3917_v28, %v4814_v52  ;;  %v1950_v1 = vcombine.low %v1756_v3, %v1763_v14  ;;  %4083 = vmatprep.subr.bf16.mxu0 %v4523_v58  ;;  %v3918_v9 = vcombine.high %v1756_v3, %v1763_v14 }
 0x4b2   : > { %v1822_v36 = vrot.slane %v1814_v33, %v4820_v62  ;;  %v1984_v4 = vcombine.low %v1806_v54, %v1813_v25  ;;  %v3919_v32 = vcombine.high %v1806_v54, %v1813_v25  ;;  %v1829_v50 = vrot.slane %v1815_v37, %v4820_v62 }
 0x4b3   : > { %v1957_v6 = vrot.slane %v1950_v1, %v4814_v52  ;;  %v2688_v12 = vpack.c.bf16 %v2675_v2, %v2674_v56  ;;  %v1965_v61 = vrot.slane %v3918_v9, %v4814_v52  ;;  %v1966_v41 = vcombine.low %v1941_v5, %v1949_v38 }
 0x4b4   : > { %v1991_v20 = vrot.slane %v1984_v4, %v4814_v52  ;;  %v1999_v63 = vrot.slane %v3919_v32, %v4814_v52  ;;  %v2000_v0 = vcombine.low %v1822_v36, %v1829_v50  ;;  %v3920_v46 = vcombine.high %v1822_v36, %v1829_v50 }
 0x4b5   : > { %4068 = vmatmul.mubr.msk.bf16.vlgmr.msra.gmra.mrb[24].mxu1 %vm2066_vm2, %v2688_v12  ;;  %v1974_v17 = vcombine.low %v1957_v6, %v1965_v61  ;;  %v1973_v59 = vrot.slane %v1966_v41, %v4820_v62  ;;  %v2681_v13 = vmul.f32 %v4303_v29, %v5212_v30  ;;  %v2680_v40 = vmul.f32 %v4305_v22, %v5202_v24  ;;  %v2632_v30 = vpop.xlane.xlu0 %2631 }
 0x4b6   : > { %4074 = vmatmul.mubr.msk.bf16.vlgmr.msra.gmra.mrb[24].mxu0 %vm2066_vm2, %v2689_v18  ;;  %4079 = vmatprep.mubr.msk.bf16.mxu1 %vm4524_vm1, %v4523_v58  ;;  %v2007_v48 = vrot.slane %v2000_v0, %v4814_v52  ;;  %v2015_v10 = vrot.slane %v3920_v46, %v4814_v52  ;;  %v2016_v21 = vcombine.low %v1991_v20, %v1999_v63  ;;  %4306 = vrcp.f32 %v2632_v30 }
 0x4b7   : > { %4085 = vmatprep.mubr.msk.bf16.mxu0 %vm4524_vm1, %v4523_v58  ;;  %v1981_v23 = vrot.slane %v1974_v17, %v4820_v62  ;;  %v2691_v55 = vpack.c.bf16 %v2681_v13, %v2680_v40 }
 0x4b8   : > { %v2024_v26 = vcombine.low %v2007_v48, %v2015_v10  ;;  %v2023_v8 = vrot.slane %v2016_v21, %v4820_v62 }
 0x4b9   : > { %v1982_v15 = vcombine.low %v1973_v59, %v1981_v23  ;;  %v1983_v51 = vcombine.high %v1973_v59, %v1981_v23  ;;  %v2647_v49 = vpop.xlane.xlu0 %2646 }
 0x4ba   : > { %v2031_v27 = vrot.slane %v2024_v26, %v4820_v62 }
 0x4bb   : > { %v2054_v43 = vshrl.u32 %v1982_v15, 16  ;;  %v2062_v2 = vshrl.u32 %v1983_v51, 16 }
 0x4bc   : > { %v2032_v34 = vcombine.low %v2023_v8, %v2031_v27  ;;  %v2033_v35 = vcombine.high %v2023_v8, %v2031_v27 }
 0x4bd   : > { %v2653_v24 = vpop.xlane.xlu0 %2652 }
 0x4be   : > { %v2052_v60 = vpack.i.b16 %v2032_v34, %v1982_v15  ;;  %v2055_v45 = vshrl.u32 %v2032_v34, 16  ;;  %v2063_v53 = vshrl.u32 %v2033_v35, 16  ;;  %v2060_v37 = vpack.i.b16 %v2033_v35, %v1983_v51 }
 0x4c0   : > { %4078 = vmatpush3.bf16.msra.mxu1 %v2052_v60  ;;  %v2056_v11 = vpack.i.b16 %v2055_v45, %v2054_v43  ;;  %v2064_v47 = vpack.i.b16 %v2063_v53, %v2062_v2  ;;  %v4307_v28 = vpop.eup %4306 }
 0x4c1   : > { %4089 = vmatprep.subr.bf16.mxu1 %v4523_v58  ;;  %v2678_v19 = vmul.f32 %v4307_v28, %v5218_v39 }
 0x4c2   : > { %4084 = vmatpush3.bf16.msra.mxu0 %v2056_v11 }
 0x4c3   : > { %4095 = vmatprep.subr.bf16.mxu0 %v4523_v58 }
 0x4c5   : > { %4086 = vmatmul.mubr.msk.bf16.vlgmr.msra.gmra.mrb[28].mxu0 %vm2066_vm2, %v2691_v55 }
 0x4c6   : > { %4096 = vmatpush3.bf16.msra.mxu0 %v2064_v47  ;;  %4097 = vmatprep.mubr.msk.bf16.mxu0 %vm4524_vm1, %v4523_v58 }
 0x4d7   : > { %v2635_v3 = vpop.xlane.xlu1 %2634 }
 0x4d8   : > { %4308 = vrcp.f32 %v2635_v3 }
 0x4db   : > { %v2644_v14 = vpop.xlane.xlu1 %2643 }
 0x4dc   : > { %4310 = vrcp.f32 %v2644_v14 }
 0x4dd   : > { %4312 = vrcp.f32 %v2647_v49 }
 0x4de   : > { %4314 = vrcp.f32 %v2653_v24 }
 0x4df   : > { %v2650_v7 = vpop.xlane.xlu1 %2649 }
 0x4e0   : > { %4316 = vrcp.f32 %v2650_v7 }
 0x4e2   : > { %v4309_v56 = vpop.eup %4308 }
 0x4e3   : > { %v2679_v54 = vmul.f32 %v4309_v56, %v5244_v16 }
 0x4e5   : > { %v2690_v25 = vpack.c.bf16 %v2679_v54, %v2678_v19 }
 0x4e6   : > { %v4311_v33 = vpop.eup %4310 }
 0x4e7   : > { %v4313_v5 = vpop.eup %4312  ;;  %4080 = vmatmul.mubr.msk.bf16.vlgmr.msra.gmra.mrb[28].mxu1 %vm2066_vm2, %v2690_v25  ;;  %v2682_v1 = vmul.f32 %v4311_v33, %v5264_v57 }
 0x4e8   : > { %v4315_v38 = vpop.eup %4314  ;;  %4090 = vmatpush3.bf16.msra.mxu1 %v2060_v37  ;;  %4091 = vmatprep.mubr.msk.bf16.mxu1 %vm4524_vm1, %v4523_v58  ;;  %v2683_v9 = vmul.f32 %v4313_v5, %v5222_v42  ;;  %vm3642_vm1 = vcmask 261120  }
 0x4e9   : > { %v2685_v39 = vmul.f32 %v4315_v38, %v5226_v44 }
 0x4ea   : > { %v4317_v36 = vpop.eup %4316  ;;  %v2692_v4 = vpack.c.bf16 %v2683_v9, %v2682_v1 }
 0x4eb   : > { %v2684_v16 = vmul.f32 %v4317_v36, %v5270_v31 }
 0x4ed   : > { %v2693_v32 = vpack.c.bf16 %v2685_v39, %v2684_v16 }
 0x4ef   : > { %4092 = vmatmul.mubr.msk.bf16.vlgmr.msra.gmra.mrb[32].mxu1 %vm2066_vm2, %v2692_v4  ;;  %4098 = vmatmul.mubr.msk.bf16.vlgmr.msra.gmra.mrb[32].mxu0 %vm2066_vm2, %v2693_v32 }
 0x56f   : > { %v2731_v50 = vpop.f32.mrb[20].mxu1 }
 0x570   : > { %v4057_v6 = vpop.f32.mrb[21].mxu1 }
 0x571   : > { %v2734_v12 = vpop.f32.mrb[22].mxu1 }
 0x572   : > { %v4058_v61 = vpop.f32.mrb[23].mxu1 }
 0x581   : > { %v2775_v58 = vpop.f32.mrb[20].mxu0 }
 0x582   : > { %v4063_v20 = vpop.f32.mrb[21].mxu0 }
 0x583   : > { %v2778_v57 = vpop.f32.mrb[22].mxu0 }
 0x584   : > { %v4064_v63 = vpop.f32.mrb[23].mxu0 }
 0x588   : > { %v2819_v18 = vpop.f32.mrb[24].mxu1 }
 0x589   : > { %v3046_v42 = vcombine.low %v2731_v50, %v2819_v18  ;;  %v3047_v0 = vcombine.high %v2731_v50, %v2819_v18  ;;  %v4069_v44 = vpop.f32.mrb[25].mxu1  ;;  %v2863_v46 = vpop.f32.mrb[24].mxu0 }
 0x58a   : > { %v2822_v31 = vpop.f32.mrb[26].mxu1  ;;  %v3062_v41 = vcombine.low %v2775_v58, %v2863_v46  ;;  %v3063_v17 = vcombine.high %v2775_v58, %v2863_v46  ;;  %v4075_v48 = vpop.f32.mrb[25].mxu0 }
 0x58b   : > { %v3054_v10 = vrot.slane %v3046_v42, %v4814_v52  ;;  %v3061_v21 = vrot.slane %v3047_v0, %v4814_v52  ;;  %v3114_v23 = vcombine.low %v2734_v12, %v2822_v31  ;;  %v3115_v59 = vcombine.high %v2734_v12, %v2822_v31  ;;  %v4070_v26 = vpop.f32.mrb[27].mxu1  ;;  %v2866_v15 = vpop.f32.mrb[26].mxu0 }
 0x58c   : > { %v3070_v8 = vrot.slane %v3062_v41, %v4814_v52  ;;  %v3077_v27 = vrot.slane %v3063_v17, %v4814_v52  ;;  %v3130_v29 = vcombine.low %v2778_v57, %v2866_v15  ;;  %v3131_v34 = vcombine.high %v2778_v57, %v2866_v15  ;;  %v4076_v35 = vpop.f32.mrb[27].mxu0  ;;  %v4251_v26 = vld [vmem:[#allocation8 + $0x8] sm:$0xff]  }
 0x58d   : > { %v3122_v51 = vrot.slane %v3114_v23, %v4814_v52  ;;  %v3129_v13 = vrot.slane %v3115_v59, %v4814_v52  ;;  %v4250_v59 = vld [vmem:[#allocation8] sm:$0xff]  }
 0x58e   : > { %v3078_v22 = vcombine.low %v3054_v10, %v3070_v8  ;;  %v3079_v60 = vcombine.high %v3054_v10, %v3070_v8  ;;  %v3094_v43 = vcombine.low %v3061_v21, %v3077_v27  ;;  %v3095_v45 = vcombine.high %v3061_v21, %v3077_v27  ;;  %4101 = vmatprep.subr.bf16.mxu1 %v4250_v59 }
 0x58f   : > { %v3138_v11 = vrot.slane %v3130_v29, %v4814_v52  ;;  %v3145_v53 = vrot.slane %v3131_v34, %v4814_v52  ;;  %4102 = vmatpush3.bf16.msra.mxu1 %v4250_v59 }
 0x590   : > { %v3086_v40 = vrot.slane %v3078_v22, %v4820_v62  ;;  %v3093_v2 = vrot.slane %v3079_v60, %v4820_v62  ;;  %v3102_v55 = vrot.slane %v3094_v43, %v4820_v62  ;;  %v3109_v47 = vrot.slane %v3095_v45, %v4820_v62  ;;  %4103 = vmatprep.subr.bf16.mxu1 %v4251_v26 }
 0x591   : > { %v3146_v30 = vcombine.low %v3122_v51, %v3138_v11  ;;  %v3147_v49 = vcombine.high %v3122_v51, %v3138_v11  ;;  %v3162_v3 = vcombine.low %v3129_v13, %v3145_v53  ;;  %v3163_v24 = vcombine.high %v3129_v13, %v3145_v53 }
 0x592   : > { %v3318_v14 = vcombine.low %v3086_v40, %v3093_v2  ;;  %v3942_v7 = vcombine.high %v3086_v40, %v3093_v2  ;;  %v3334_v28 = vcombine.low %v3102_v55, %v3109_v47  ;;  %v3943_v56 = vcombine.high %v3102_v55, %v3109_v47 }
 0x593   : > { %v3154_v19 = vrot.slane %v3146_v30, %v4820_v62  ;;  %v3161_v54 = vrot.slane %v3147_v49, %v4820_v62  ;;  %v3170_v25 = vrot.slane %v3162_v3, %v4820_v62  ;;  %v3177_v33 = vrot.slane %v3163_v24, %v4820_v62  ;;  %4104 = vmatpush3.bf16.msra.mxu1 %v4251_v26 }
 0x594   : > { %v3325_v37 = vrot.slane %v3318_v14, %v4814_v52  ;;  %v3333_v5 = vrot.slane %v3942_v7, %v4814_v52  ;;  %v3341_v38 = vrot.slane %v3334_v28, %v4814_v52  ;;  %v3349_v1 = vrot.slane %v3943_v56, %v4814_v52 }
 0x595   : > { %v3386_v36 = vcombine.low %v3154_v19, %v3161_v54  ;;  %v3944_v9 = vcombine.high %v3154_v19, %v3161_v54  ;;  %v3402_v39 = vcombine.low %v3170_v25, %v3177_v33  ;;  %v3945_v16 = vcombine.high %v3170_v25, %v3177_v33 }
 0x596   : > { %v3350_v4 = vcombine.low %v3325_v37, %v3333_v5  ;;  %v3366_v32 = vcombine.low %v3341_v38, %v3349_v1  ;;  %v3351_v50 = vcombine.high %v3325_v37, %v3333_v5  ;;  %v3367_v6 = vcombine.high %v3341_v38, %v3349_v1 }
 0x597   : > { %v3393_v12 = vrot.slane %v3386_v36, %v4814_v52  ;;  %v3401_v61 = vrot.slane %v3944_v9, %v4814_v52  ;;  %v3409_v58 = vrot.slane %v3402_v39, %v4814_v52  ;;  %v3417_v20 = vrot.slane %v3945_v16, %v4814_v52 }
 0x598   : > { %v5386_v57 = vrot.slane %v3350_v4, %v4820_v62  ;;  %v5389_v63 = vrot.slane %v3366_v32, %v4820_v62  ;;  %v3365_v18 = vrot.slane %v3351_v50, %v4820_v62  ;;  %v3381_v42 = vrot.slane %v3367_v6, %v4820_v62  ;;  %v2951_v0 = vpop.f32.mrb[28].mxu0 }
 0x599   : > { %v3418_v44 = vcombine.low %v3393_v12, %v3401_v61  ;;  %v3434_v46 = vcombine.low %v3409_v58, %v3417_v20  ;;  %v3419_v31 = vcombine.high %v3393_v12, %v3401_v61  ;;  %v3435_v41 = vcombine.high %v3409_v58, %v3417_v20  ;;  %v4087_v17 = vpop.f32.mrb[29].mxu0 }
 0x59a   : > { %v3382_v48 = vcombine.low %v5386_v57, %v5389_v63  ;;  %v3383_v10 = vcombine.high %v5386_v57, %v5389_v63  ;;  %v3384_v21 = vcombine.low %v3365_v18, %v3381_v42  ;;  %v3385_v23 = vcombine.high %v3365_v18, %v3381_v42  ;;  %v2954_v15 = vpop.f32.mrb[30].mxu0 }
 0x59b   : > { %v5398_v8 = vrot.slane %v3418_v44, %v4820_v62  ;;  %v5401_v27 = vrot.slane %v3434_v46, %v4820_v62  ;;  %v3433_v29 = vrot.slane %v3419_v31, %v4820_v62  ;;  %v3449_v34 = vrot.slane %v3435_v41, %v4820_v62  ;;  %v4088_v35 = vpop.f32.mrb[31].mxu0 }
 0x59d   : > { %v3451_v22 = vcombine.high %v5398_v8, %v5401_v27  ;;  %v3450_v60 = vcombine.low %v5398_v8, %v5401_v27  ;;  %v3452_v43 = vcombine.low %v3433_v29, %v3449_v34  ;;  %v3453_v45 = vcombine.high %v3433_v29, %v3449_v34 }
 0x59f   : > { %v4208_v51 = vpack.i.bf16 %v3451_v22, %v3383_v10  ;;  %v4213_v13 = vpack.i.bf16 %v3452_v43, %v3384_v21  ;;  %v5409_v11 = vpack.i.bf16 %v3453_v45, %v3385_v23 }
 0x5a1   : > { %4209 = vrot.lane.b32.xlu1 %v4208_v51, %s4525_s29 }
 0x5a5   : > { %4214 = vrot.lane.b32.xlu1 %v4213_v13, %s4526_s30 }
 0x5ba   : > { %v2907_v53 = vpop.f32.mrb[28].mxu1 }
 0x5bb   : > { %v4081_v40 = vpop.f32.mrb[29].mxu1 }
 0x5bc   : > { %v2910_v2 = vpop.f32.mrb[30].mxu1 }
 0x5bd   : > { %v4082_v55 = vpop.f32.mrb[31].mxu1 }
 0x5c2   : > { %v2995_v47 = vpop.f32.mrb[32].mxu1  ;;  %v3039_v30 = vpop.f32.mrb[32].mxu0 }
 0x5c3   : > { %v3182_v49 = vcombine.low %v2907_v53, %v2995_v47  ;;  %v3183_v3 = vcombine.high %v2907_v53, %v2995_v47  ;;  %v3198_v24 = vcombine.low %v2951_v0, %v3039_v30  ;;  %v3199_v14 = vcombine.high %v2951_v0, %v3039_v30  ;;  %v4093_v7 = vpop.f32.mrb[33].mxu1  ;;  %v4099_v28 = vpop.f32.mrb[33].mxu0  ;;  %v4252_v30 = vld [vmem:[#allocation8 + $0x10] sm:$0xff]  }
 0x5c4   : > { %v2998_v56 = vpop.f32.mrb[34].mxu1  ;;  %v3042_v19 = vpop.f32.mrb[34].mxu0  ;;  %4105 = vmatprep.subr.bf16.mxu1 %v4252_v30 }
 0x5c5   : > { %v3190_v54 = vrot.slane %v3182_v49, %v4814_v52  ;;  %v3197_v25 = vrot.slane %v3183_v3, %v4814_v52  ;;  %v3206_v33 = vrot.slane %v3198_v24, %v4814_v52  ;;  %v3213_v37 = vrot.slane %v3199_v14, %v4814_v52  ;;  %v4094_v5 = vpop.f32.mrb[35].mxu1  ;;  %v4100_v38 = vpop.f32.mrb[35].mxu0  ;;  %4106 = vmatpush3.bf16.msra.mxu1 %v4252_v30 }
 0x5c6   : > { %v3250_v1 = vcombine.low %v2910_v2, %v2998_v56  ;;  %v3251_v36 = vcombine.high %v2910_v2, %v2998_v56  ;;  %v3266_v9 = vcombine.low %v2954_v15, %v3042_v19  ;;  %v3267_v39 = vcombine.high %v2954_v15, %v3042_v19 }
 0x5c7   : > { %v3214_v16 = vcombine.low %v3190_v54, %v3206_v33  ;;  %v3215_v4 = vcombine.high %v3190_v54, %v3206_v33  ;;  %v3230_v32 = vcombine.low %v3197_v25, %v3213_v37  ;;  %v3231_v50 = vcombine.high %v3197_v25, %v3213_v37 }
 0x5c8   : > { %v3258_v6 = vrot.slane %v3250_v1, %v4814_v52  ;;  %v3265_v12 = vrot.slane %v3251_v36, %v4814_v52  ;;  %v3274_v61 = vrot.slane %v3266_v9, %v4814_v52  ;;  %v3281_v58 = vrot.slane %v3267_v39, %v4814_v52 }
 0x5c9   : > { %v3222_v20 = vrot.slane %v3214_v16, %v4820_v62  ;;  %v3229_v18 = vrot.slane %v3215_v4, %v4820_v62  ;;  %v3238_v42 = vrot.slane %v3230_v32, %v4820_v62  ;;  %v3245_v0 = vrot.slane %v3231_v50, %v4820_v62  ;;  %v4253_v4 = vld [vmem:[#allocation8 + $0x18] sm:$0xff]  }
 0x5ca   : > { %v3282_v44 = vcombine.low %v3258_v6, %v3274_v61  ;;  %v3283_v46 = vcombine.high %v3258_v6, %v3274_v61  ;;  %v3298_v31 = vcombine.low %v3265_v12, %v3281_v58  ;;  %v3299_v41 = vcombine.high %v3265_v12, %v3281_v58  ;;  %4107 = vmatprep.subr.bf16.mxu1 %v4253_v4 }
 0x5cb   : > { %v3454_v17 = vcombine.low %v3222_v20, %v3229_v18  ;;  %v3946_v10 = vcombine.high %v3222_v20, %v3229_v18  ;;  %v3470_v21 = vcombine.low %v3238_v42, %v3245_v0  ;;  %v3947_v23 = vcombine.high %v3238_v42, %v3245_v0  ;;  %4108 = vmatpush3.bf16.msra.mxu1 %v4253_v4 }
 0x5cc   : > { %v3290_v59 = vrot.slane %v3282_v44, %v4820_v62  ;;  %v3297_v26 = vrot.slane %v3283_v46, %v4820_v62  ;;  %v3306_v15 = vrot.slane %v3298_v31, %v4820_v62  ;;  %v3313_v29 = vrot.slane %v3299_v41, %v4820_v62 }
 0x5cd   : > { %v3461_v34 = vrot.slane %v3454_v17, %v4814_v52  ;;  %v3469_v35 = vrot.slane %v3946_v10, %v4814_v52  ;;  %v3477_v22 = vrot.slane %v3470_v21, %v4814_v52  ;;  %v3485_v43 = vrot.slane %v3947_v23, %v4814_v52 }
 0x5ce   : > { %v3522_v45 = vcombine.low %v3290_v59, %v3297_v26  ;;  %v3948_v51 = vcombine.high %v3290_v59, %v3297_v26  ;;  %v3538_v13 = vcombine.low %v3306_v15, %v3313_v29  ;;  %v3949_v53 = vcombine.high %v3306_v15, %v3313_v29 }
 0x5cf   : > { %v3487_v40 = vcombine.high %v3461_v34, %v3469_v35  ;;  %v3503_v2 = vcombine.high %v3477_v22, %v3485_v43  ;;  %v3486_v55 = vcombine.low %v3461_v34, %v3469_v35  ;;  %v3502_v47 = vcombine.low %v3477_v22, %v3485_v43 }
 0x5d0   : > { %v3529_v49 = vrot.slane %v3522_v45, %v4814_v52  ;;  %v3537_v3 = vrot.slane %v3948_v51, %v4814_v52  ;;  %v3545_v24 = vrot.slane %v3538_v13, %v4814_v52  ;;  %v3553_v14 = vrot.slane %v3949_v53, %v4814_v52 }
 0x5d1   : > { %v3501_v7 = vrot.slane %v3487_v40, %v4820_v62  ;;  %v3517_v28 = vrot.slane %v3503_v2, %v4820_v62  ;;  %v3494_v56 = vrot.slane %v3486_v55, %v4820_v62  ;;  %v3510_v19 = vrot.slane %v3502_v47, %v4820_v62 }
 0x5d2   : > { %v3555_v54 = vcombine.high %v3529_v49, %v3537_v3  ;;  %v3571_v25 = vcombine.high %v3545_v24, %v3553_v14  ;;  %v3554_v33 = vcombine.low %v3529_v49, %v3537_v3  ;;  %v3570_v37 = vcombine.low %v3545_v24, %v3553_v14 }
 0x5d3   : > { %v3520_v5 = vcombine.low %v3501_v7, %v3517_v28  ;;  %v3518_v38 = vcombine.low %v3494_v56, %v3510_v19  ;;  %v3519_v1 = vcombine.high %v3494_v56, %v3510_v19  ;;  %v3521_v36 = vcombine.high %v3501_v7, %v3517_v28 }
 0x5d4   : > { %v3569_v52 = vrot.slane %v3555_v54, %v4820_v62  ;;  %v3585_v9 = vrot.slane %v3571_v25, %v4820_v62  ;;  %v3562_v39 = vrot.slane %v3554_v33, %v4820_v62  ;;  %v3578_v16 = vrot.slane %v3570_v37, %v4820_v62 }
 0x5d6   : > { %v3588_v32 = vcombine.low %v3569_v52, %v3585_v9  ;;  %v3587_v50 = vcombine.high %v3562_v39, %v3578_v16  ;;  %v3586_v6 = vcombine.low %v3562_v39, %v3578_v16  ;;  %v3589_v12 = vcombine.high %v3569_v52, %v3585_v9 }
 0x5d8   : > { %v4223_v61 = vpack.i.bf16 %v3588_v32, %v3520_v5  ;;  %v4218_v58 = vpack.i.bf16 %v3587_v50, %v3519_v1  ;;  %v4233_v20 = vpack.i.bf16 %v3589_v12, %v3521_v36 }
 0x5da   : > { %4224 = vrot.lane.b32.xlu1 %v4223_v61, %s4526_s30  ;;  %4219 = vrot.lane.b32.xlu0 %v4218_v58, %s4525_s29  ;;  %s4438_s29 = scalar_lea.vmem %s4437_s27, 1024 }
 0x5db   : > { %p4440_p4 = scmp.lt.s32.totalorder %s4438_s29, %s4432_s18 }
 0x5dd   : > { %p4441_p9 = por %p4440_p4, %p4439_p2 }
 0x5de   : > { %4234 = vrot.lane.b32.xlu1 %v4233_v20, %s4527_s9  ;;  %4229 = vrot.lane.b32.xlu0 %v5409_v11, %s4527_s9 }
 0x5df   : > { %p4442_p13 = pnand %p4441_p9, %p4435_p1 }
 0x613   : > { %v4210_v18 = vpop.permute.xlu1 %4209 }
 0x614   : > { %v4212_v42 = vunpack.i.h.bf16 %v4210_v18  ;;  %v4211_v0 = vunpack.i.l.bf16 %v4210_v18 }
 0x616   : > { %v3638_v11 = vsel %vm2066_vm2, %v3382_v48, %v4211_v0  ;;  %v3639_v15 = vsel %vm2066_vm2, %v3450_v60, %v4212_v42  ;;  %v3950_v60 = vld [vmem:[%s5523_s5] ss:$0 sm:$0xff] }
 0x617   : > { %v4215_v62 = vpop.permute.xlu1 %4214 }
 0x618   : > { %v4217_v17 = vunpack.i.h.bf16 %v4215_v62  ;;  %v4216_v10 = vunpack.i.l.bf16 %v4215_v62 }
 0x61a   : > { %v3643_v51 = vsel %vm3642_vm1, %v3638_v11, %v4216_v10  ;;  %v3644_v13 = vsel %vm3642_vm1, %v3639_v15, %v4217_v17 }
 0x64c   : > { %v4225_v44 = vpop.permute.xlu1 %4224  ;;  %v4220_v46 = vpop.permute.xlu0 %4219 }
 0x64d   : > { %v4222_v31 = vunpack.i.h.bf16 %v4220_v46  ;;  %v4221_v41 = vunpack.i.l.bf16 %v4220_v46  ;;  %v4227_v21 = vunpack.i.h.bf16 %v4225_v44  ;;  %v4226_v23 = vunpack.i.l.bf16 %v4225_v44 }
 0x64f   : > { %v3640_v59 = vsel %vm2066_vm2, %v3518_v38, %v4221_v41  ;;  %v3641_v26 = vsel %vm2066_vm2, %v3586_v6, %v4222_v31 }
 0x650   : > { %v4235_v29 = vpop.permute.xlu1 %4234  ;;  %v4230_v34 = vpop.permute.xlu0 %4229  ;;  %v3645_v53 = vsel %vm3642_vm1, %v3640_v59, %v4226_v23  ;;  %v3646_v57 = vsel %vm3642_vm1, %v3641_v26, %v4227_v21 }
 0x651   : > { %v4237_v35 = vunpack.i.h.bf16 %v4235_v29  ;;  %v4236_v22 = vunpack.i.l.bf16 %v4235_v29  ;;  %v4232_v43 = vunpack.i.h.bf16 %v4230_v34  ;;  %v4231_v45 = vunpack.i.l.bf16 %v4230_v34 }
 0x653   : > { %v3650_v63 = vsel %vm3647_vm6, %v3645_v53, %v4236_v22  ;;  %v3651_v48 = vsel %vm3647_vm6, %v3646_v57, %v4237_v35  ;;  %v3649_v40 = vsel %vm3647_vm6, %v3644_v13, %v4232_v43  ;;  %v3648_v2 = vsel %vm3647_vm6, %v3643_v51, %v4231_v45 }
 0x654   : > { %v3653_v8 = vpack.c.bf16 %v3651_v48, %v3650_v63  ;;  %v3652_v27 = vpack.c.bf16 %v3649_v40, %v3648_v2 }
 0x656   : > { %4109 = vmatprep.mubr.msk.bf16.mxu1 %vm384_vm0, %v3652_v27 }
 0x657   : > { %4110 = vmatmul.mubr.msk.bf16.vlgmr.msra.gmra.mrb[36].mxu1 %vm384_vm0, %v3653_v8 }
 0x72a   : > { %v4111_v55 = vpop.f32.mrb[36].mxu1 }
 0x72b   : > { %v3742_v47 = vadd.f32 %v4111_v55, %v3950_v60  ;;  %v3733_v30 = vpop.f32.mrb[37].mxu1 }
 0x72c   : > { %v3734_v49 = vadd.f32 %v3950_v60, %v3733_v30  ;;  %v4112_v3 = vpop.f32.mrb[38].mxu1 }
 0x72d   : > { %3750 = vst.msk [vmem:[%s314_s15 + $0x10] sm:$0xff] %vm384_vm0, %v3742_v47  ;;  %v3745_v24 = vadd.f32 %v4112_v3, %v3950_v60  ;;  %v3736_v14 = vpop.f32.mrb[39].mxu1 }
 0x72e   : > { %3748 = vst.msk [vmem:[%s314_s15] sm:$0xff] %vm384_vm0, %v3734_v49  ;;  %v3737_v7 = vadd.f32 %v3950_v60, %v3736_v14 }
 0x72f   : > { %3751 = vst.msk [vmem:[%s314_s15 + $0x18] sm:$0xff] %vm384_vm0, %v3745_v24 }
 0x730   : > { %3749 = vst.msk [vmem:[%s314_s15 + $0x8] sm:$0xff] %vm384_vm0, %v3737_v7 }
 0x731   : > { %4445 = shalt.err (!%p4442_p13)
}
 0x732   : > { %s4446_s30 = scalar_lea.hbm %s5472_s7, 512  ;;  %s4450_s11 = scalar_lea.hbm %s5524_s6, 2048 }
 0x733   : > { %p4447_p10 = scmp.ne.s32.totalorder %s5472_s7, %s4446_s30  ;;  %p4451_p6 = scmp.lt.u32.totalorder %s5472_s7, %s5524_s6 }
 0x734   : > { %p4452_p0 = scmp.lt.u32.totalorder %s4450_s11, %s4446_s30  ;;  %p4454_p7 = scmp.lt.u32.totalorder %s4446_s30, %s5472_s7 }
 0x735   : > { %p4448_p8 = pnand %p4447_p10, %p4716_p5 }
 0x736   : > { %p4453_p3 = por %p4452_p0, %p4451_p6 }
 0x737   : > { %p4449_p12 = pneg %p4448_p8 }
 0x738   : > { %p4455_p11 = por %p4454_p7, %p4453_p3 }
 0x73a   : > { %p4456_p1 = pnand %p4455_p11, %p4449_p12 }
 0x73c   : > { %4459 = shalt.err (!%p4456_p1)
}
 0x73d   : > { %s4529_s12 = smov 128   ;;  %s4530_s26 = smov 8  }
 0x73e   : > { %4127 = dma.vmem_to_hbm [thread:$0]  (%p4716_p5), %s5466_s8, 512, %s5472_s7, %s3753_s25, %s4529_s12, %s4529_s12, %s4530_s26  }
 0x73f PF: > { %p4154_p2 = scmp.ge.s32.totalorder %s4506_s24, 2  ;;  %s3782_s18 = sand.u32 1, %s4494_s21  }
 0x740   : > { %p5542_p4 = scmp.ne.s32.totalorder %s5529_s28, 0  ;;  %s3783_s13 = scalar_lea.sflag [#allocation4], %s3782_s18 }
 0x742   : > { %p4144_p9 = pnand %p4154_p2, %p5542_p4 }
 0x744   : > { %4489 = dma.done.wait (!%p4144_p9), %s3783_s13, 512  }
 0x745   : > { %4491 = vsyncadd (!%p4144_p9), %s3783_s13, 4294966784  ;;  %p21_p13 = scmp.ge.s32.totalorder %s4702_s14, 6   ;;  %s5543_s21 = smov %s4498_s22 }
 0x746   : > { %s5544_s22 = smov %s4502_s23  ;;  %s5545_s23 = smov %s4712_s17 }
 0x747   : > { %s5546_s24 = smov %s4702_s14  ;;  %23 = sbr.rel (!%p21_p13) target bundleno = 7 (0x7), region = 102 }
 0x74e   :  { %3788 = vsyncpa [#allocation3], 1 }
 0x74f   :  { %3790 = vsyncpa [#allocation3 + $0x1], 1 }
 0x750   :  { %3791 = vsyncpa [#allocation6], 1 }
 0x751   :  { %3792 = vsyncpa [#allocation9], 1 }
 0x752   :  { %3793 = vsyncpa [#allocation4], 1 }
 0x753   :  { %3795 = vsyncpa [#allocation4 + $0x1], 1 }

</bundles_post_ra>
